<compile_context>
chip_gen: v7x
topology: tpu7x:2x2x1
jax: 0.10.0
libtpu: 0.0.40
codegen_flags: <defaults>
</compile_context>

<pallas_src>
import functools

import jax
import jax.numpy as jnp
from jax.experimental import pallas as pl
from jax.experimental.pallas import tpu as pltpu


def _round_up(v, m):
    return ((v + m - 1) // m) * m


def _tiles(N, tile_rows, tile_cols):
    """Row/col tile sizes, tile counts and padded extents for an N x N graph."""
    tr = min(tile_rows, _round_up(N, 8))       # sublane-aligned
    tc = min(tile_cols, _round_up(N, 128))     # lane-aligned
    n_r = _round_up(N, tr) // tr
    n_c = _round_up(N, tc) // tc
    return tr, tc, n_r, n_c, n_r * tr, n_c * tc


def pad_adjacency(adj_mask, *, tile_rows=512, tile_cols=2048):
    """One-time setup: 0/1 adjacency mask -> int8, padded to the tile grid.

    Doing this once (instead of per call) avoids re-materializing an extra
    full N^2 HBM copy before every kernel launch.
    """
    N = adj_mask.shape[0]
    _, _, _, _, Nr, Nc = _tiles(N, tile_rows, tile_cols)
    adj_i8 = (adj_mask > 0).astype(jnp.int8)
    return jnp.zeros((Nr, Nc), jnp.int8).at[:N, :N].set(adj_i8)


def _make_gat_kernel(n_head, h_resident, tc):
    """One (row-tile, col-tile) grid step; all heads handled in the body."""

    def kernel(a_src_ref, a_dst_ref, h_ref, adj_ref, out_ref, acc_ref, rsum_ref):
        c = pl.program_id(1)

        @pl.when(c == 0)
        def _init():
            acc_ref[...] = jnp.zeros_like(acc_ref)
            rsum_ref[...] = jnp.zeros_like(rsum_ref)

        # int8 adjacency tile -> f32 0/1 mask, computed once and shared by all heads.
        mask = adj_ref[...].astype(jnp.float32)                      # (tr, tc)

        for hd in range(n_head):  # n_head is a small compile-time constant
            # Attention logit for edge (i, j): z = h[i]@attn_src + h[j]@attn_dst.
            # a_src is a (tr, 1) column, a_dst a (1, tc) row -> broadcast add,
            # no transpose needed.
            z = a_src_ref[hd, :, :] + a_dst_ref[hd, :, :]            # (tr, tc) f32
            # -LeakyReLU_{0.2}(z) == min(-z, -0.2*z).  Clamp the exponent so a
            # masked-out huge logit can never become inf * 0 = NaN below.
            neg_lrelu = jnp.minimum(jnp.minimum(-z, -0.2 * z), 80.0)
            A = jnp.exp(neg_lrelu) * mask                            # EUP exp; mask-multiply
            # e_row_sum accumulation (XLU lane reduce, f32).
            rsum_ref[hd, :, :] += jnp.sum(A, axis=1, keepdims=True)  # (tr, 1)
            # TODO(synk): attention dropout omitted — module is run with attn_drop == 0.0
            if h_resident:
                # whole per-head h is resident in VMEM; slice this column block.
                h_blk = h_ref[hd, pl.ds(pl.multiple_of(c * tc, 128), tc), :]
            else:
                h_blk = h_ref[hd, :, :]
            # Numerator accumulation: bf16 operands on the MXU, f32 accumulate.
            acc_ref[hd, :, :] += jnp.dot(A.astype(jnp.bfloat16), h_blk,
                                         preferred_element_type=jnp.float32)

        @pl.when(c == pl.num_programs(1) - 1)
        def _finalize():
            # Guard empty / padded rows (reference would give inf/NaN there);
            # approx reciprocal runs on the EUP (free slot).
            inv = pl.reciprocal(jnp.maximum(rsum_ref[...], 1e-20), approx=True)
            out_ref[...] = (acc_ref[...] * inv).astype(out_ref.dtype)

    return kernel


@functools.partial(jax.jit, static_argnames=("tile_rows", "tile_cols"))
def multi_head_graph_attention(x, adj, w, attn, *, tile_rows=512, tile_cols=2048):
    """Forward of MultiHeadGraphAttention (diag=True, attn_drop=0, bias=None).

    x:    (N, F) f32
    adj:  (N, N) 0/1 mask (any dtype), or an already pad_adjacency()-prepared
          int8 array padded to the tile grid (preferred for repeated calls).
    w:    (H, 1, F)   diag transform weights
    attn: (H, 2F, 1)  attention vectors
    returns (H, N, F)
    """
    assert tile_rows % 8 == 0 and tile_cols % 128 == 0
    H = w.shape[0]
    N, F = x.shape
    tr, tc, n_r, n_c, Nr, Nc = _tiles(N, tile_rows, tile_cols)

    # ---- tiny O(N*F) per-head precompute in plain XLA (f32) ----
    h32 = x[None, :, :] * w                                      # (H, N, F) diag transform
    a_src = jnp.einsum('hnf,hf->hn', h32, attn[:, :F, 0])        # (H, N)  h_i . attn_src
    a_dst = jnp.einsum('hnf,hf->hn', h32, attn[:, F:, 0])        # (H, N)  h_j . attn_dst

    # ---- pad to the tile grid ----
    if adj.dtype == jnp.int8 and adj.shape == (Nr, Nc):
        adj_p = adj                                              # preprocessed once at setup
    else:
        adj_p = jnp.zeros((Nr, Nc), jnp.int8).at[:N, :N].set((adj > 0).astype(jnp.int8))
    h_p = jnp.zeros((H, Nc, F), jnp.bfloat16).at[:, :N, :].set(h32.astype(jnp.bfloat16))
    a_src_p = jnp.zeros((H, Nr, 1), jnp.float32).at[:, :N, 0].set(a_src)
    a_dst_p = jnp.zeros((H, 1, Nc), jnp.float32).at[:, 0, :N].set(a_dst)

    # Keep the whole per-head h resident in VMEM when it comfortably fits
    # (then it is DMA'd once per call, not once per row tile); otherwise stream
    # column blocks.  Budget counts the pipeline's double buffering.
    h_resident = (H * Nc * F * 2) * 2 <= 12 * 1024 * 1024
    if h_resident:
        h_spec = pl.BlockSpec((H, Nc, F), lambda r, c: (0, 0, 0))   # constant block -> 1 DMA
    else:
        h_spec = pl.BlockSpec((H, tc, F), lambda r, c: (0, c, 0))

    out = pl.pallas_call(
        _make_gat_kernel(H, h_resident, tc),
        out_shape=jax.ShapeDtypeStruct((H, Nr, F), x.dtype),
        grid_spec=pltpu.PrefetchScalarGridSpec(
            num_scalar_prefetch=0,
            grid=(n_r, n_c),                                        # reduction (col) axis last
            in_specs=[
                pl.BlockSpec((H, tr, 1), lambda r, c: (0, r, 0)),   # per-row logit half
                pl.BlockSpec((H, 1, tc), lambda r, c: (0, 0, c)),   # per-col logit half
                h_spec,                                             # values (bf16)
                pl.BlockSpec((tr, tc), lambda r, c: (r, c)),        # int8 adjacency tile
            ],
            out_specs=pl.BlockSpec((H, tr, F), lambda r, c: (0, r, 0)),
            scratch_shapes=[
                pltpu.VMEM((H, tr, F), jnp.float32),   # numerator accumulators (all heads)
                pltpu.VMEM((H, tr, 1), jnp.float32),   # row-sum accumulators
            ],
        ),
        compiler_params=pltpu.CompilerParams(
            dimension_semantics=("parallel", "arbitrary"),          # rows split across TCs
            vmem_limit_bytes=32 * 1024 * 1024,
        ),
    )(a_src_p, a_dst_p, h_p, adj_p)

    return out[:, :N, :]


def _reference(x, adj_mask, w, attn):
    """Pure-JAX dense f32 reference matching the torch forward (attn_drop=0, no bias)."""
    N, F = x.shape
    outs = []
    for i in range(w.shape[0]):
        h = x * w[i]                                         # (N, F)
        a_src = h @ attn[i, :F, :]                           # (N, 1)
        a_dst = h @ attn[i, F:, :]                           # (N, 1)
        z = a_src + a_dst.T
        lrelu = jnp.where(z >= 0, z, 0.2 * z)
        A = jnp.where(adj_mask > 0, jnp.exp(-lrelu), 0.0)
        row_sum = A.sum(axis=1, keepdims=True)
        outs.append((A @ h) / row_sum)
    return jnp.stack(outs, axis=0)


if __name__ == "__main__":
    N = 384          # ent_num: > one 256-wide col tile and NOT a multiple of the test tiles
    F = 128          # in_feat == out_feat (diag=True); lane-dense output tiles
    n_head = 2

    key = jax.random.PRNGKey(0)
    kx, kadj, kw, ka = jax.random.split(key, 4)

    x = jax.random.normal(kx, (N, F), dtype=jnp.float32)

    # dense 0/1 adjacency with self-loops (so every row has at least one edge)
    adj_rand = (jax.random.uniform(kadj, (N, N)) < 0.3).astype(jnp.float32)
    adj_mask = jnp.maximum(adj_rand, jnp.eye(N, dtype=jnp.float32))

    # deterministic parameter init (shapes from the nn.Parameter definitions)
    w = jax.random.normal(kw, (n_head, 1, F), dtype=jnp.float32) * 0.1
    attn = jax.random.normal(ka, (n_head, 2 * F, 1), dtype=jnp.float32) * 0.1

    ref = _reference(x, adj_mask, w, attn)

    # 1) Multi-tile path: grid (3, 2) with padded rows/cols — exercises the
    #    init / accumulate / finalize paths.  Adjacency preprocessed once.
    adj_pre = pad_adjacency(adj_mask, tile_rows=128, tile_cols=256)
    out_tiled = multi_head_graph_attention(x, adj_pre, w, attn,
                                           tile_rows=128, tile_cols=256)
    out_tiled = jax.block_until_ready(out_tiled)
    assert out_tiled.shape == (n_head, N, F)
    # bf16 operands on the A @ h matmul (f32 accumulate) + approx reciprocal
    # -> relaxed tolerance vs the all-f32 reference.
    assert jnp.allclose(out_tiled, ref, atol=2e-3, rtol=2e-2), "multi-tile mismatch"

    # 2) Default-tile convenience path (raw mask; single tile here since N < 2048).
    out_default = multi_head_graph_attention(x, adj_mask, w, attn)
    out_default = jax.block_until_ready(out_default)
    assert out_default.shape == (n_head, N, F)
    assert jnp.allclose(out_default, ref, atol=2e-3, rtol=2e-2), "default-tile mismatch"

    print("KERNEL_OK")
</pallas_src>

<mosaic_0001>
module attributes {stable_mosaic.version = 11 : i64} {
  func.func @kernel(%arg0: i32, %arg1: i32, %arg2: memref<2x128x1xf32, #tpu.memory_space<vmem>>, %arg3: memref<2x1x256xf32, #tpu.memory_space<vmem>>, %arg4: memref<2x512x128xbf16, #tpu.memory_space<vmem>>, %arg5: memref<128x256xi8, #tpu.memory_space<vmem>>, %arg6: memref<2x128x128xf32, #tpu.memory_space<vmem>>, %arg7: memref<2x128x128xf32, #tpu.memory_space<vmem>>, %arg8: memref<2x128x1xf32, #tpu.memory_space<vmem>>) attributes {dimension_semantics = [#tpu.dimension_semantics<parallel>, #tpu.dimension_semantics<arbitrary>], iteration_bounds = array<i64: 3, 2>, scalar_prefetch = 0 : i64, scratch_operands = 2 : i64, tpu.core_type = #tpu.core_type<tc>, window_params = [{transform_indices = @transform_0, window_bounds = array<i64: 2, 128, 1>}, {transform_indices = @transform_1, window_bounds = array<i64: 2, 1, 256>}, {pipeline_mode = #tpu.pipeline_mode<synchronous>, transform_indices = @transform_2, window_bounds = array<i64: 2, 512, 128>}, {transform_indices = @transform_3, window_bounds = array<i64: 128, 256>}, {transform_indices = @transform_4, window_bounds = array<i64: 2, 128, 128>}]} {
    %c0_i32 = arith.constant 0 : i32
    %0 = arith.cmpi eq, %arg1, %c0_i32 : i32
    %1 = arith.extui %0 : i1 to i32
    %c0_i32_0 = arith.constant 0 : i32
    %2 = arith.cmpi ne, %1, %c0_i32_0 : i32
    scf.if %2 {
      %cst_52 = arith.constant 0.000000e+00 : f32
      %82 = vector.broadcast %cst_52 : f32 to vector<2x128x128xf32>
      %c0_53 = arith.constant 0 : index
      %c0_54 = arith.constant 0 : index
      %c0_55 = arith.constant 0 : index
      %83 = vector.load %arg7[%c0_53, %c0_54, %c0_55] : memref<2x128x128xf32, #tpu.memory_space<vmem>>, vector<2x128x128xf32>
      tpu.vector_store %arg7[%c0_53, %c0_54, %c0_55], %82 {strides = array<i32>} : memref<2x128x128xf32, #tpu.memory_space<vmem>>, vector<2x128x128xf32>,
      %cst_56 = arith.constant 0.000000e+00 : f32
      %84 = vector.broadcast %cst_56 : f32 to vector<2x128x1xf32>
      %c0_57 = arith.constant 0 : index
      %c0_58 = arith.constant 0 : index
      %c0_59 = arith.constant 0 : index
      %85 = vector.load %arg8[%c0_57, %c0_58, %c0_59] : memref<2x128x1xf32, #tpu.memory_space<vmem>>, vector<2x128x1xf32>
      tpu.vector_store %arg8[%c0_57, %c0_58, %c0_59], %84 {strides = array<i32>} : memref<2x128x1xf32, #tpu.memory_space<vmem>>, vector<2x128x1xf32>,
    } else {
    }
    %c0 = arith.constant 0 : index
    %c0_1 = arith.constant 0 : index
    %3 = vector.load %arg5[%c0, %c0_1] : memref<128x256xi8, #tpu.memory_space<vmem>>, vector<128x256xi8>
    %4 = arith.sitofp %3 : vector<128x256xi8> to vector<128x256xf32>
    %c0_2 = arith.constant 0 : index
    %c0_3 = arith.constant 0 : index
    %c0_4 = arith.constant 0 : index
    %5 = vector.load %arg2[%c0_2, %c0_3, %c0_4] : memref<2x128x1xf32, #tpu.memory_space<vmem>>, vector<1x128x1xf32>
    %6 = vector.shape_cast %5 : vector<1x128x1xf32> to vector<128x1xf32>
    %c0_5 = arith.constant 0 : index
    %c0_6 = arith.constant 0 : index
    %c0_7 = arith.constant 0 : index
    %7 = vector.load %arg3[%c0_5, %c0_6, %c0_7] : memref<2x1x256xf32, #tpu.memory_space<vmem>>, vector<1x1x256xf32>
    %8 = vector.shape_cast %7 : vector<1x1x256xf32> to vector<1x256xf32>
    %9 = vector.broadcast %6 : vector<128x1xf32> to vector<128x256xf32>
    %10 = vector.broadcast %8 : vector<1x256xf32> to vector<128x256xf32>
    %11 = arith.addf %9, %10 : vector<128x256xf32>
    %cst = arith.constant 0.000000e+00 : f32
    %12 = vector.broadcast %cst : f32 to vector<128x256xf32>
    %13 = arith.subf %12, %11 : vector<128x256xf32>
    %cst_8 = arith.constant -2.000000e-01 : f32
    %14 = vector.broadcast %cst_8 : f32 to vector<128x256xf32>
    %15 = arith.mulf %14, %11 : vector<128x256xf32>
    %16 = arith.minimumf %13, %15 : vector<128x256xf32>
    %cst_9 = arith.constant 8.000000e+01 : f32
    %17 = vector.broadcast %cst_9 : f32 to vector<128x256xf32>
    %18 = arith.minimumf %16, %17 : vector<128x256xf32>
    %19 = math.exp %18 : vector<128x256xf32>
    %20 = arith.mulf %19, %4 : vector<128x256xf32>
    %c0_10 = arith.constant 0 : index
    %c0_11 = arith.constant 0 : index
    %c0_12 = arith.constant 0 : index
    %21 = vector.load %arg8[%c0_10, %c0_11, %c0_12] : memref<2x128x1xf32, #tpu.memory_space<vmem>>, vector<1x128x1xf32>
    %22 = vector.shape_cast %21 : vector<1x128x1xf32> to vector<128x1xf32>
    %cst_13 = arith.constant dense<0.000000e+00> : vector<128xf32>
    %23 = vector.multi_reduction <add>, %20, %cst_13 [1] : vector<128x256xf32> to vector<128xf32>
    %24 = vector.shape_cast %23 : vector<128xf32> to vector<128x1xf32>
    %25 = arith.addf %22, %24 : vector<128x1xf32>
    %c0_14 = arith.constant 0 : index
    %c0_15 = arith.constant 0 : index
    %c0_16 = arith.constant 0 : index
    %26 = vector.load %arg8[%c0_14, %c0_15, %c0_16] : memref<2x128x1xf32, #tpu.memory_space<vmem>>, vector<1x128x1xf32>
    %27 = vector.shape_cast %26 : vector<1x128x1xf32> to vector<128x1xf32>
    %28 = vector.shape_cast %25 : vector<128x1xf32> to vector<1x128x1xf32>
    tpu.vector_store %arg8[%c0_14, %c0_15, %c0_16], %28 {strides = array<i32>} : memref<2x128x1xf32, #tpu.memory_space<vmem>>, vector<1x128x1xf32>,
    %c256_i32 = arith.constant 256 : i32
    %29 = arith.muli %arg1, %c256_i32 : i32
    %30 = tpu.assume_multiple %29, 128 : i32
    %c0_17 = arith.constant 0 : index
    %31 = arith.index_cast %30 : i32 to index
    %c0_18 = arith.constant 0 : index
    %32 = vector.load %arg4[%c0_17, %31, %c0_18] : memref<2x512x128xbf16, #tpu.memory_space<vmem>>, vector<1x256x128xbf16>
    %33 = vector.shape_cast %32 : vector<1x256x128xbf16> to vector<256x128xbf16>
    %c0_19 = arith.constant 0 : index
    %c0_20 = arith.constant 0 : index
    %c0_21 = arith.constant 0 : index
    %34 = vector.load %arg7[%c0_19, %c0_20, %c0_21] : memref<2x128x128xf32, #tpu.memory_space<vmem>>, vector<1x128x128xf32>
    %35 = vector.shape_cast %34 : vector<1x128x128xf32> to vector<128x128xf32>
    %36 = arith.truncf %20 : vector<128x256xf32> to vector<128x256xbf16>
    %cst_22 = arith.constant dense<0.000000e+00> : vector<128x128xf32>
    %37 = tpu.matmul %36, %33, %cst_22 {dimension_numbers = #tpu.dot_dimension_numbers<[1], [0], [0], [1], [0, 0, 1, 1], [], []>} : vector<128x256xbf16>, vector<256x128xbf16>, vector<128x128xf32> -> vector<128x128xf32>
    %38 = arith.addf %35, %37 : vector<128x128xf32>
    %c0_23 = arith.constant 0 : index
    %c0_24 = arith.constant 0 : index
    %c0_25 = arith.constant 0 : index
    %39 = vector.load %arg7[%c0_23, %c0_24, %c0_25] : memref<2x128x128xf32, #tpu.memory_space<vmem>>, vector<1x128x128xf32>
    %40 = vector.shape_cast %39 : vector<1x128x128xf32> to vector<128x128xf32>
    %41 = vector.shape_cast %38 : vector<128x128xf32> to vector<1x128x128xf32>
    tpu.vector_store %arg7[%c0_23, %c0_24, %c0_25], %41 {strides = array<i32>} : memref<2x128x128xf32, #tpu.memory_space<vmem>>, vector<1x128x128xf32>,
    %c1 = arith.constant 1 : index
    %c0_26 = arith.constant 0 : index
    %c0_27 = arith.constant 0 : index
    %42 = vector.load %arg2[%c1, %c0_26, %c0_27] : memref<2x128x1xf32, #tpu.memory_space<vmem>>, vector<1x128x1xf32>
    %43 = vector.shape_cast %42 : vector<1x128x1xf32> to vector<128x1xf32>
    %c1_28 = arith.constant 1 : index
    %c0_29 = arith.constant 0 : index
    %c0_30 = arith.constant 0 : index
    %44 = vector.load %arg3[%c1_28, %c0_29, %c0_30] : memref<2x1x256xf32, #tpu.memory_space<vmem>>, vector<1x1x256xf32>
    %45 = vector.shape_cast %44 : vector<1x1x256xf32> to vector<1x256xf32>
    %46 = vector.broadcast %43 : vector<128x1xf32> to vector<128x256xf32>
    %47 = vector.broadcast %45 : vector<1x256xf32> to vector<128x256xf32>
    %48 = arith.addf %46, %47 : vector<128x256xf32>
    %cst_31 = arith.constant 0.000000e+00 : f32
    %49 = vector.broadcast %cst_31 : f32 to vector<128x256xf32>
    %50 = arith.subf %49, %48 : vector<128x256xf32>
    %cst_32 = arith.constant -2.000000e-01 : f32
    %51 = vector.broadcast %cst_32 : f32 to vector<128x256xf32>
    %52 = arith.mulf %51, %48 : vector<128x256xf32>
    %53 = arith.minimumf %50, %52 : vector<128x256xf32>
    %cst_33 = arith.constant 8.000000e+01 : f32
    %54 = vector.broadcast %cst_33 : f32 to vector<128x256xf32>
    %55 = arith.minimumf %53, %54 : vector<128x256xf32>
    %56 = math.exp %55 : vector<128x256xf32>
    %57 = arith.mulf %56, %4 : vector<128x256xf32>
    %c1_34 = arith.constant 1 : index
    %c0_35 = arith.constant 0 : index
    %c0_36 = arith.constant 0 : index
    %58 = vector.load %arg8[%c1_34, %c0_35, %c0_36] : memref<2x128x1xf32, #tpu.memory_space<vmem>>, vector<1x128x1xf32>
    %59 = vector.shape_cast %58 : vector<1x128x1xf32> to vector<128x1xf32>
    %cst_37 = arith.constant dense<0.000000e+00> : vector<128xf32>
    %60 = vector.multi_reduction <add>, %57, %cst_37 [1] : vector<128x256xf32> to vector<128xf32>
    %61 = vector.shape_cast %60 : vector<128xf32> to vector<128x1xf32>
    %62 = arith.addf %59, %61 : vector<128x1xf32>
    %c1_38 = arith.constant 1 : index
    %c0_39 = arith.constant 0 : index
    %c0_40 = arith.constant 0 : index
    %63 = vector.load %arg8[%c1_38, %c0_39, %c0_40] : memref<2x128x1xf32, #tpu.memory_space<vmem>>, vector<1x128x1xf32>
    %64 = vector.shape_cast %63 : vector<1x128x1xf32> to vector<128x1xf32>
    %65 = vector.shape_cast %62 : vector<128x1xf32> to vector<1x128x1xf32>
    tpu.vector_store %arg8[%c1_38, %c0_39, %c0_40], %65 {strides = array<i32>} : memref<2x128x1xf32, #tpu.memory_space<vmem>>, vector<1x128x1xf32>,
    %c256_i32_41 = arith.constant 256 : i32
    %66 = arith.muli %arg1, %c256_i32_41 : i32
    %67 = tpu.assume_multiple %66, 128 : i32
    %c1_42 = arith.constant 1 : index
    %68 = arith.index_cast %67 : i32 to index
    %c0_43 = arith.constant 0 : index
    %69 = vector.load %arg4[%c1_42, %68, %c0_43] : memref<2x512x128xbf16, #tpu.memory_space<vmem>>, vector<1x256x128xbf16>
    %70 = vector.shape_cast %69 : vector<1x256x128xbf16> to vector<256x128xbf16>
    %c1_44 = arith.constant 1 : index
    %c0_45 = arith.constant 0 : index
    %c0_46 = arith.constant 0 : index
    %71 = vector.load %arg7[%c1_44, %c0_45, %c0_46] : memref<2x128x128xf32, #tpu.memory_space<vmem>>, vector<1x128x128xf32>
    %72 = vector.shape_cast %71 : vector<1x128x128xf32> to vector<128x128xf32>
    %73 = arith.truncf %57 : vector<128x256xf32> to vector<128x256xbf16>
    %cst_47 = arith.constant dense<0.000000e+00> : vector<128x128xf32>
    %74 = tpu.matmul %73, %70, %cst_47 {dimension_numbers = #tpu.dot_dimension_numbers<[1], [0], [0], [1], [0, 0, 1, 1], [], []>} : vector<128x256xbf16>, vector<256x128xbf16>, vector<128x128xf32> -> vector<128x128xf32>
    %75 = arith.addf %72, %74 : vector<128x128xf32>
    %c1_48 = arith.constant 1 : index
    %c0_49 = arith.constant 0 : index
    %c0_50 = arith.constant 0 : index
    %76 = vector.load %arg7[%c1_48, %c0_49, %c0_50] : memref<2x128x128xf32, #tpu.memory_space<vmem>>, vector<1x128x128xf32>
    %77 = vector.shape_cast %76 : vector<1x128x128xf32> to vector<128x128xf32>
    %78 = vector.shape_cast %75 : vector<128x128xf32> to vector<1x128x128xf32>
    tpu.vector_store %arg7[%c1_48, %c0_49, %c0_50], %78 {strides = array<i32>} : memref<2x128x128xf32, #tpu.memory_space<vmem>>, vector<1x128x128xf32>,
    %c1_i32 = arith.constant 1 : i32
    %79 = arith.cmpi eq, %arg1, %c1_i32 : i32
    %80 = arith.extui %79 : i1 to i32
    %c0_i32_51 = arith.constant 0 : i32
    %81 = arith.cmpi ne, %80, %c0_i32_51 : i32
    scf.if %81 {
      %c0_52 = arith.constant 0 : index
      %c0_53 = arith.constant 0 : index
      %c0_54 = arith.constant 0 : index
      %82 = vector.load %arg8[%c0_52, %c0_53, %c0_54] : memref<2x128x1xf32, #tpu.memory_space<vmem>>, vector<2x128x1xf32>
      %cst_55 = arith.constant 9.99999968E-21 : f32
      %83 = vector.broadcast %cst_55 : f32 to vector<2x128x1xf32>
      %84 = arith.maximumf %82, %83 : vector<2x128x1xf32>
      %85 = tpu.reciprocal %84 {approx = true} : vector<2x128x1xf32> -> vector<2x128x1xf32>
      %c0_56 = arith.constant 0 : index
      %c0_57 = arith.constant 0 : index
      %c0_58 = arith.constant 0 : index
      %86 = vector.load %arg7[%c0_56, %c0_57, %c0_58] : memref<2x128x128xf32, #tpu.memory_space<vmem>>, vector<2x128x128xf32>
      %87 = vector.broadcast %85 : vector<2x128x1xf32> to vector<2x128x128xf32>
      %88 = arith.mulf %86, %87 : vector<2x128x128xf32>
      %c0_59 = arith.constant 0 : index
      %c0_60 = arith.constant 0 : index
      %c0_61 = arith.constant 0 : index
      %89 = vector.load %arg6[%c0_59, %c0_60, %c0_61] : memref<2x128x128xf32, #tpu.memory_space<vmem>>, vector<2x128x128xf32>
      tpu.vector_store %arg6[%c0_59, %c0_60, %c0_61], %88 {strides = array<i32>} : memref<2x128x128xf32, #tpu.memory_space<vmem>>, vector<2x128x128xf32>,
    } else {
    }
    return
  }
  func.func @transform_0(%arg0: i32, %arg1: i32) -> (i32, i32, i32) {
    %c0_i32 = arith.constant 0 : i32
    %c0_i32_0 = arith.constant 0 : i32
    %c0_i32_1 = arith.constant 0 : i32
    return %c0_i32, %arg0, %c0_i32_0 : i32, i32, i32
  }
  func.func @transform_1(%arg0: i32, %arg1: i32) -> (i32, i32, i32) {
    %c0_i32 = arith.constant 0 : i32
    %c0_i32_0 = arith.constant 0 : i32
    %c0_i32_1 = arith.constant 0 : i32
    return %c0_i32, %c0_i32_0, %arg1 : i32, i32, i32
  }
  func.func @transform_2(%arg0: i32, %arg1: i32) -> (i32, i32, i32) {
    %c0_i32 = arith.constant 0 : i32
    %c0_i32_0 = arith.constant 0 : i32
    %c0_i32_1 = arith.constant 0 : i32
    %c0_i32_2 = arith.constant 0 : i32
    return %c0_i32, %c0_i32_0, %c0_i32_1 : i32, i32, i32
  }
  func.func @transform_3(%arg0: i32, %arg1: i32) -> (i32, i32) {
    %c0_i32 = arith.constant 0 : i32
    return %arg0, %arg1 : i32, i32
  }
  func.func @transform_4(%arg0: i32, %arg1: i32) -> (i32, i32, i32) {
    %c0_i32 = arith.constant 0 : i32
    %c0_i32_0 = arith.constant 0 : i32
    %c0_i32_1 = arith.constant 0 : i32
    return %c0_i32, %arg0, %c0_i32_0 : i32, i32, i32
  }
}

</mosaic_0001>

<bundles_post_ra>
// kernel: multi_head_graph_attention.1
= control target key start
LH: loop header
LB: loop body
LE: loop exit
PB: predicated region body
PF: predicated region fallthrough
CT: control target
= control target key end

     0   :  { %s4397_s0 = inlined_call_operand.vmem [shape: f32[2,384,1], index: 0, kind: input, shape index: {}]   ;;  %s4398_s1 = inlined_call_operand.vmem [shape: f32[2,1,512], index: 1, kind: input, shape index: {}]   ;;  %s4399_s2 = inlined_call_operand.vmem [shape: bf16[2,512,128], index: 2, kind: input, shape index: {}]   ;;  %s4400_s3 = inlined_call_operand.vmem [shape: s8[384,512], index: 3, kind: input, shape index: {}]   ;;  %s4401_s4 = inlined_call_operand.hbm [shape: f32[2,384,128], index: 4, kind: output, shape index: {}]  }
   0x1   :  { %4413 = sst [smem:[#allocation23_spill]] %s4397_s0 }
   0x2   :  { %9 = vsyncpa [#allocation8], 0 }
   0x3   :  { %11 = vsyncpa [#allocation8 + $0x1], 0  ;;  %s3386_s15 = smov 0   ;;  %s3388_s16 = smov 0  }
   0x4   :  { %s3390_s17 = smov 0   ;;  %s3392_s18 = smov 0  }
   0x5   :  { %s3394_s19 = smov 0   ;;  %s3396_s20 = smov 0  }
   0x6   :  { %s3398_s21 = smov 0   ;;  %s3400_s22 = smov 0  }
   0x7   :  { %s3402_s23 = smov 0   ;;  %s3404_s24 = smov 0  }
   0x8   :  { %s3406_s25 = smov 0   ;;  %s3408_s26 = smov 0  }
   0x9 LB: > { %4414 = sst [smem:[#allocation12_spill]] %s3329_s21  ;;  %s2663_s27 = sadd.s32 4294967295, %s3349_s26   ;;  %s3349_s26 = sphi %s3408_s26, %s17_s26   ;;  %s3345_s25 = sphi %s3406_s25, %s4455_s25   ;;  %s3341_s24 = sphi %s3404_s24, %s4454_s24   ;;  %s3337_s23 = sphi %s3402_s23, %s4453_s23   ;;  %s3333_s22 = sphi %s3400_s22, %s4452_s22   ;;  %s3329_s21 = sphi %s3398_s21, %s4443_s21   ;;  %s3325_s20 = sphi %s3396_s20, %s4451_s20   ;;  %s3321_s19 = sphi %s3394_s19, %s4450_s19   ;;  %s3317_s18 = sphi %s3392_s18, %s4449_s18   ;;  %s3313_s17 = sphi %s3390_s17, %s4448_s17   ;;  %s3309_s16 = sphi %s3388_s16, %s4447_s16   ;;  %s3305_s15 = sphi %s3386_s15, %s4446_s15  }
   0xa   : > { %s2664_s28 = sadd.s32 4294967294, %s3349_s26   ;;  %s26_s29 = sadd.s32 1, %s3341_s24 }
   0xb   : > { %s29_s30 = sadd.s32 1, %s3345_s25  ;;  %p27_p0 = scmp.ge.s32.totalorder %s26_s29, 2 }
   0xc   : > { %s36_s5 = sadd.s32 1, %s3329_s21  ;;  %p43_p1 = scmp.ne.s32.totalorder %s3329_s21, %s3325_s20 }
   0xd   : > { %p44_p2 = scmp.eq.s32.totalorder %s3349_s26, 0  ;;  %s4457_s29 = smov (%p27_p0, %s26_s29), 0 }
   0xe   : > { %4415 = sst [smem:[#allocation13_spill]] %s4457_s29  ;;  %s4459_s30 = smov (!%p27_p0, %s29_s30), %s3345_s25 }
   0xf   : > { %p3462_p3 = por %p44_p2, %p43_p1  ;;  %s59_s7 = ssub.s32 %s3341_s24, %s4457_s29 }
  0x10   : > { %p31_p4 = scmp.ge.s32.totalorder %s4459_s30, 3  ;;  %p60_p5 = scmp.eq.s32.totalorder %s59_s7, 0 }
  0x11   : > { %s62_s8 = sadd.s32 1, %s3321_s19  ;;  %p69_p6 = scmp.ne.s32.totalorder %s3321_s19, %s3317_s18 }
  0x12   : > { %s4461_s30 = smov (%p31_p4, %s4459_s30), 0  ;;  %s111_s13 = sadd.s32 1, %s3313_s17 }
  0x13   : > { %4417 = sst [smem:[#allocation14_spill]] %s4461_s30  ;;  %s33_s10 = ssub.s32 %s3345_s25, %s4461_s30 }
  0x14   : > { %s3474_s9 = scalar_select %p60_p5, %s3321_s19, %s62_s8  }
  0x15   : > { %p3480_p7 = por %p69_p6, %p44_p2  ;;  %p34_p8 = scmp.eq.s32.totalorder %s33_s10, 0 }
  0x16   : > { %4418 = sst [smem:[#allocation15_spill]] %s3474_s9  ;;  %s108_s12 = sor.u32 %s59_s7, %s33_s10 }
  0x17   : > { %p109_p9 = scmp.eq.s32.totalorder %s108_s12, 0  ;;  %p118_p10 = scmp.ne.s32.totalorder %s3313_s17, %s3309_s16 }
  0x18   : > { %s3486_s14 = scalar_select %p34_p8, %s3329_s21, %s36_s5  }
  0x19   : > { %s3489_s29 = scalar_select %p109_p9, %s3313_s17, %s111_s13  }
  0x1a   : > { %4420 = sst [smem:[#allocation16_spill]] %s3486_s14  ;;  %p148_p11 = scmp.eq.s32.totalorder %s2663_s27, 5 }
  0x1b   : > { %p153_p12 = scmp.ne.s32.totalorder %s3325_s20, %s3305_s15  ;;  %p154_p13 = scmp.eq.s32.totalorder %s2664_s28, 5 }
  0x1c   : > { %p3497_p0 = por %p118_p10, %p44_p2  ;;  %p3504_p4 = por %p148_p11, %p43_p1 }
  0x1d   : > { %p3508_p5 = por %p154_p13, %p153_p12  ;;  %p2666_p6 = scmp.ge.s32.totalorder %s3349_s26, 6 }
  0x1f   : > { %173 = sbr.rel (%p2666_p6) target bundleno = 82 (0x52), region = 20 }
  0x26   : > { %176 = sbr.rel (!%p3462_p3) target bundleno = 64 (0x40), region = 24  ;;  %s178_s27 = sand.u32 (%p3462_p3), 1, %s3329_s21  }
  0x27   : > { %s2773_s28 = sshll.u32 (%p3462_p3), %s3345_s25, 7  ;;  %s2667_s5 = sshll.u32 (%p3462_p3), %s178_s27, 8 }
  0x28   : > { %s4424_s0 = sld [smem:[#allocation23_spill]] (%p3462_p3)  ;;  %s3525_s6 = scalar_lea.vmem (%p3462_p3), [#allocation4], %s2667_s5 }
  0x2e   : > { %s3520_s13 = scalar_lea.vmem %s4424_s0, %s2773_s28 }
  0x2f   : > { %v273_v0 = vld [vmem:[%s3520_s13] sm:$0xff]  ;;  %v275_v1 = vld [vmem:[%s3520_s13 + $0x8] sm:$0xff]  ;;  %v277_v2 = vld [vmem:[%s3520_s13 + $0x10] sm:$0xff] }
  0x30   : > { %274 = vst [vmem:[%s3525_s6] sm:$0xff] %v273_v0  ;;  %276 = vst [vmem:[%s3525_s6 + $0x8] sm:$0xff] %v275_v1  ;;  %v279_v3 = vld [vmem:[%s3520_s13 + $0x18] sm:$0xff]  ;;  %v281_v4 = vld [vmem:[%s3520_s13 + $0x20] sm:$0xff] }
  0x31   : > { %278 = vst [vmem:[%s3525_s6 + $0x10] sm:$0xff] %v277_v2  ;;  %v283_v5 = vld [vmem:[%s3520_s13 + $0x28] sm:$0xff]  ;;  %280 = vst [vmem:[%s3525_s6 + $0x18] sm:$0xff] %v279_v3  ;;  %v285_v6 = vld [vmem:[%s3520_s13 + $0x30] sm:$0xff] }
  0x32   : > { %282 = vst [vmem:[%s3525_s6 + $0x20] sm:$0xff] %v281_v4  ;;  %284 = vst [vmem:[%s3525_s6 + $0x28] sm:$0xff] %v283_v5  ;;  %v287_v7 = vld [vmem:[%s3520_s13 + $0x38] sm:$0xff]  ;;  %v289_v8 = vld [vmem:[%s3520_s13 + $0x40] sm:$0xff] }
  0x33   : > { %286 = vst [vmem:[%s3525_s6 + $0x30] sm:$0xff] %v285_v6  ;;  %288 = vst [vmem:[%s3525_s6 + $0x38] sm:$0xff] %v287_v7  ;;  %v291_v9 = vld [vmem:[%s3520_s13 + $0x48] sm:$0xff]  ;;  %v293_v10 = vld [vmem:[%s3520_s13 + $0x50] sm:$0xff] }
  0x34   : > { %290 = vst [vmem:[%s3525_s6 + $0x40] sm:$0xff] %v289_v8  ;;  %v295_v11 = vld [vmem:[%s3520_s13 + $0x58] sm:$0xff]  ;;  %292 = vst [vmem:[%s3525_s6 + $0x48] sm:$0xff] %v291_v9  ;;  %v297_v12 = vld [vmem:[%s3520_s13 + $0x60] sm:$0xff] }
  0x35   : > { %294 = vst [vmem:[%s3525_s6 + $0x50] sm:$0xff] %v293_v10  ;;  %296 = vst [vmem:[%s3525_s6 + $0x58] sm:$0xff] %v295_v11  ;;  %v299_v13 = vld [vmem:[%s3520_s13 + $0x68] sm:$0xff]  ;;  %v301_v14 = vld [vmem:[%s3520_s13 + $0x70] sm:$0xff] }
  0x36   : > { %298 = vst [vmem:[%s3525_s6 + $0x60] sm:$0xff] %v297_v12  ;;  %300 = vst [vmem:[%s3525_s6 + $0x68] sm:$0xff] %v299_v13  ;;  %v303_v15 = vld [vmem:[%s3520_s13 + $0x78] sm:$0xff]  ;;  %v305_v16 = vld [vmem:[%s3520_s13 + $0x180] sm:$0xff] }
  0x37   : > { %302 = vst [vmem:[%s3525_s6 + $0x70] sm:$0xff] %v301_v14  ;;  %v307_v17 = vld [vmem:[%s3520_s13 + $0x188] sm:$0xff]  ;;  %304 = vst [vmem:[%s3525_s6 + $0x78] sm:$0xff] %v303_v15  ;;  %v309_v18 = vld [vmem:[%s3520_s13 + $0x190] sm:$0xff] }
  0x38   : > { %306 = vst [vmem:[%s3525_s6 + $0x80] sm:$0xff] %v305_v16  ;;  %308 = vst [vmem:[%s3525_s6 + $0x88] sm:$0xff] %v307_v17  ;;  %v311_v19 = vld [vmem:[%s3520_s13 + $0x198] sm:$0xff]  ;;  %v313_v20 = vld [vmem:[%s3520_s13 + $0x1a0] sm:$0xff] }
  0x39   : > { %310 = vst [vmem:[%s3525_s6 + $0x90] sm:$0xff] %v309_v18  ;;  %312 = vst [vmem:[%s3525_s6 + $0x98] sm:$0xff] %v311_v19  ;;  %v315_v21 = vld [vmem:[%s3520_s13 + $0x1a8] sm:$0xff]  ;;  %v317_v22 = vld [vmem:[%s3520_s13 + $0x1b0] sm:$0xff] }
  0x3a   : > { %314 = vst [vmem:[%s3525_s6 + $0xa0] sm:$0xff] %v313_v20  ;;  %v319_v23 = vld [vmem:[%s3520_s13 + $0x1b8] sm:$0xff]  ;;  %316 = vst [vmem:[%s3525_s6 + $0xa8] sm:$0xff] %v315_v21  ;;  %v321_v24 = vld [vmem:[%s3520_s13 + $0x1c0] sm:$0xff] }
  0x3b   : > { %318 = vst [vmem:[%s3525_s6 + $0xb0] sm:$0xff] %v317_v22  ;;  %320 = vst [vmem:[%s3525_s6 + $0xb8] sm:$0xff] %v319_v23  ;;  %v323_v25 = vld [vmem:[%s3520_s13 + $0x1c8] sm:$0xff]  ;;  %v325_v26 = vld [vmem:[%s3520_s13 + $0x1d0] sm:$0xff] }
  0x3c   : > { %322 = vst [vmem:[%s3525_s6 + $0xc0] sm:$0xff] %v321_v24  ;;  %324 = vst [vmem:[%s3525_s6 + $0xc8] sm:$0xff] %v323_v25  ;;  %v327_v27 = vld [vmem:[%s3520_s13 + $0x1d8] sm:$0xff]  ;;  %v329_v28 = vld [vmem:[%s3520_s13 + $0x1e0] sm:$0xff] }
  0x3d   : > { %326 = vst [vmem:[%s3525_s6 + $0xd0] sm:$0xff] %v325_v26  ;;  %v331_v29 = vld [vmem:[%s3520_s13 + $0x1e8] sm:$0xff]  ;;  %328 = vst [vmem:[%s3525_s6 + $0xd8] sm:$0xff] %v327_v27  ;;  %v333_v30 = vld [vmem:[%s3520_s13 + $0x1f0] sm:$0xff] }
  0x3e   : > { %330 = vst [vmem:[%s3525_s6 + $0xe0] sm:$0xff] %v329_v28  ;;  %332 = vst [vmem:[%s3525_s6 + $0xe8] sm:$0xff] %v331_v29  ;;  %v335_v31 = vld [vmem:[%s3520_s13 + $0x1f8] sm:$0xff] }
  0x3f   : > { %334 = vst [vmem:[%s3525_s6 + $0xf0] sm:$0xff] %v333_v30  ;;  %336 = vst [vmem:[%s3525_s6 + $0xf8] sm:$0xff] %v335_v31 }
  0x40 PF: > { %342 = sbr.rel (!%p3480_p7) target bundleno = 71 (0x47), region = 62  ;;  %s344_s27 = sand.u32 (%p3480_p7), 1, %s3321_s19  }
  0x41   : > { %s2671_s28 = sshll.u32 (%p3480_p7), %s3341_s24, 1  ;;  %s2670_s5 = sshll.u32 (%p3480_p7), %s344_s27, 2 }
  0x42   : > { %s348_s0 = scalar_lea.vmem (%p3480_p7), %s4398_s1, %s2671_s28  ;;  %s346_s14 = scalar_lea.vmem (%p3480_p7), [#allocation5], %s2670_s5 }
  0x43   : > { %v364_v32 = vld [vmem:[%s348_s0] sm:$0x3] (%p3480_p7)  ;;  %v366_v33 = vld [vmem:[%s348_s0 + $0x4] sm:$0x3] (%p3480_p7) }
  0x44   : > { %365 = vst [vmem:[%s346_s14] sm:$0x3] (%p3480_p7), %v364_v32  ;;  %367 = vst [vmem:[%s346_s14 + $0x2] sm:$0x3] (%p3480_p7), %v366_v33 }
  0x47 PF: > { %386 = sbr.rel (!%p3497_p0) target bundleno = 82 (0x52), region = 96  ;;  %s388_s11 = sand.u32 (%p3497_p0), 1, %s3313_s17  }
  0x48   : > { %s2674_s13 = sshll.u32 (%p3497_p0), %s3341_s24, 1  ;;  %s2672_s6 = sshll.u32 (%p3497_p0), %s388_s11, 6 }
  0x49   : > { %s2774_s27 = sshll.u32 (%p3497_p0), %s3345_s25, 4  ;;  %s390_s14 = scalar_lea.vmem (%p3497_p0), [#allocation6], %s2672_s6 }
  0x4a   : > { %s394_s21 = sadd.s32 (%p3497_p0), %s2774_s27, %s2674_s13 }
  0x4b   : > { %s2676_s9 = sshll.u32 (%p3497_p0), %s394_s21, 3 }
  0x4c   : > { %s396_s0 = scalar_lea.vmem (%p3497_p0), %s4400_s3, %s2676_s9 }
  0x4d   : > { %v409_v34 = vld [vmem:[%s396_s0] sm:$0xff] (%p3497_p0)  ;;  %v411_v35 = vld [vmem:[%s396_s0 + $0x8] sm:$0xff] (%p3497_p0) }
  0x4e   : > { %v413_v36 = vld [vmem:[%s396_s0 + $0x20] sm:$0xff]  ;;  %410 = vst [vmem:[%s390_s14] sm:$0xff] %v409_v34  ;;  %412 = vst [vmem:[%s390_s14 + $0x8] sm:$0xff] %v411_v35  ;;  %v415_v37 = vld [vmem:[%s396_s0 + $0x28] sm:$0xff] }
  0x4f   : > { %414 = vst [vmem:[%s390_s14 + $0x10] sm:$0xff] %v413_v36  ;;  %v417_v38 = vld [vmem:[%s396_s0 + $0x40] sm:$0xff]  ;;  %v419_v39 = vld [vmem:[%s396_s0 + $0x48] sm:$0xff]  ;;  %416 = vst [vmem:[%s390_s14 + $0x18] sm:$0xff] %v415_v37 }
  0x50   : > { %418 = vst [vmem:[%s390_s14 + $0x20] sm:$0xff] %v417_v38  ;;  %420 = vst [vmem:[%s390_s14 + $0x28] sm:$0xff] %v419_v39  ;;  %v421_v40 = vld [vmem:[%s396_s0 + $0x60] sm:$0xff]  ;;  %v423_v41 = vld [vmem:[%s396_s0 + $0x68] sm:$0xff] }
  0x51   : > { %422 = vst [vmem:[%s390_s14 + $0x30] sm:$0xff] %v421_v40  ;;  %424 = vst [vmem:[%s390_s14 + $0x38] sm:$0xff] %v423_v41 }
  0x52 PF: > { %p2677_p1 = scmp.ge.s32.totalorder %s3349_s26, 1  ;;  %p429_p2 = scmp.lt.s32.totalorder %s3349_s26, 7 }
  0x54   : > { %p430_p3 = pnand %p2677_p1, %p429_p2 }
  0x56   : > { %433 = sbr.rel (%p430_p3) target bundleno = 831 (0x33f), region = 119 }
  0x5d   : > { %s436_s21 = sand.u32 1, %s3325_s20   ;;  %s443_s9 = sand.u32 1, %s3317_s18  }
  0x5e   : > { %s2678_s8 = sshll.u32 %s436_s21, 8  ;;  %s3609_s5 = sshll.u32 %s443_s9, 2 }
  0x5f   : > { %s450_s12 = sand.u32 1, %s3309_s16   ;;  %s3612_s13 = scalar_lea.vmem [#allocation4], %s2678_s8 }
  0x60   : > { %s2680_s11 = sshll.u32 %s450_s12, 6  ;;  %s445_s6 = scalar_lea.vmem [#allocation5], %s3609_s5 }
  0x61   : > { %s3615_s27 = scalar_lea.vmem [#allocation6], %s2680_s11  ;;  %s3617_s10 = scalar_lea.vmem [#allocation7], %s2678_s8 }
  0x62   : > { %p2682_p7 = scmp.ne.s32.totalorder %s3333_s22, 0 }
  0x63   : > { %vm525_vm0 = vcmask (!%p2682_p7), 7168   ;;  %v3351_v42 = vmov (!%p2682_p7), 0.0  }
  0x64   : > { %492 = sbr.rel (%p2682_p7) target bundleno = 132 (0x84), region = 135  ;;  %493 = vst [vmem:[#allocation2] sm:$0xff] (!%p2682_p7), %v3351_v42  ;;  %494 = vst [vmem:[#allocation2 + $0x8] sm:$0xff] (!%p2682_p7), %v3351_v42 }
  0x65   : > { %495 = vst [vmem:[#allocation2 + $0x10] sm:$0xff] (!%p2682_p7), %v3351_v42  ;;  %496 = vst [vmem:[#allocation2 + $0x18] sm:$0xff] (!%p2682_p7), %v3351_v42 }
  0x66   : > { %497 = vst [vmem:[#allocation2 + $0x20] sm:$0xff] (!%p2682_p7), %v3351_v42  ;;  %498 = vst [vmem:[#allocation2 + $0x28] sm:$0xff] (!%p2682_p7), %v3351_v42 }
  0x67   : > { %499 = vst [vmem:[#allocation2 + $0x30] sm:$0xff] (!%p2682_p7), %v3351_v42  ;;  %500 = vst [vmem:[#allocation2 + $0x38] sm:$0xff] (!%p2682_p7), %v3351_v42 }
  0x68   : > { %501 = vst [vmem:[#allocation2 + $0x40] sm:$0xff] (!%p2682_p7), %v3351_v42  ;;  %502 = vst [vmem:[#allocation2 + $0x48] sm:$0xff] (!%p2682_p7), %v3351_v42 }
  0x69   : > { %503 = vst [vmem:[#allocation2 + $0x50] sm:$0xff] (!%p2682_p7), %v3351_v42  ;;  %504 = vst [vmem:[#allocation2 + $0x58] sm:$0xff] (!%p2682_p7), %v3351_v42 }
  0x6a   : > { %505 = vst [vmem:[#allocation2 + $0x60] sm:$0xff] (!%p2682_p7), %v3351_v42  ;;  %506 = vst [vmem:[#allocation2 + $0x68] sm:$0xff] (!%p2682_p7), %v3351_v42 }
  0x6b   : > { %507 = vst [vmem:[#allocation2 + $0x70] sm:$0xff] %v3351_v42  ;;  %508 = vst [vmem:[#allocation2 + $0x78] sm:$0xff] %v3351_v42 }
  0x6c   : > { %509 = vst [vmem:[#allocation2 + $0x80] sm:$0xff] %v3351_v42  ;;  %510 = vst [vmem:[#allocation2 + $0x88] sm:$0xff] %v3351_v42 }
  0x6d   : > { %511 = vst [vmem:[#allocation2 + $0x90] sm:$0xff] %v3351_v42  ;;  %512 = vst [vmem:[#allocation2 + $0x98] sm:$0xff] %v3351_v42 }
  0x6e   : > { %513 = vst [vmem:[#allocation2 + $0xa0] sm:$0xff] %v3351_v42  ;;  %514 = vst [vmem:[#allocation2 + $0xa8] sm:$0xff] %v3351_v42 }
  0x6f   : > { %515 = vst [vmem:[#allocation2 + $0xb0] sm:$0xff] %v3351_v42  ;;  %516 = vst [vmem:[#allocation2 + $0xb8] sm:$0xff] %v3351_v42 }
  0x70   : > { %517 = vst [vmem:[#allocation2 + $0xc0] sm:$0xff] %v3351_v42  ;;  %518 = vst [vmem:[#allocation2 + $0xc8] sm:$0xff] %v3351_v42 }
  0x71   : > { %519 = vst [vmem:[#allocation2 + $0xd0] sm:$0xff] %v3351_v42  ;;  %520 = vst [vmem:[#allocation2 + $0xd8] sm:$0xff] %v3351_v42 }
  0x72   : > { %521 = vst [vmem:[#allocation2 + $0xe0] sm:$0xff] %v3351_v42  ;;  %522 = vst [vmem:[#allocation2 + $0xe8] sm:$0xff] %v3351_v42 }
  0x73   : > { %523 = vst [vmem:[#allocation2 + $0xf0] sm:$0xff] %v3351_v42  ;;  %524 = vst [vmem:[#allocation2 + $0xf8] sm:$0xff] %v3351_v42 }
  0x74   : > { %526 = vst.msk [vmem:[#allocation3] sm:$0xff] %vm525_vm0, %v3351_v42  ;;  %527 = vst.msk [vmem:[#allocation3 + $0x8] sm:$0xff] %vm525_vm0, %v3351_v42 }
  0x75   : > { %528 = vst.msk [vmem:[#allocation3 + $0x10] sm:$0xff] %vm525_vm0, %v3351_v42  ;;  %529 = vst.msk [vmem:[#allocation3 + $0x18] sm:$0xff] %vm525_vm0, %v3351_v42 }
  0x76   : > { %530 = vst.msk [vmem:[#allocation3 + $0x20] sm:$0xff] %vm525_vm0, %v3351_v42  ;;  %531 = vst.msk [vmem:[#allocation3 + $0x28] sm:$0xff] %vm525_vm0, %v3351_v42 }
  0x77   : > { %532 = vst.msk [vmem:[#allocation3 + $0x30] sm:$0xff] %vm525_vm0, %v3351_v42  ;;  %533 = vst.msk [vmem:[#allocation3 + $0x38] sm:$0xff] %vm525_vm0, %v3351_v42 }
  0x78   : > { %534 = vst.msk [vmem:[#allocation3 + $0x40] sm:$0xff] %vm525_vm0, %v3351_v42  ;;  %535 = vst.msk [vmem:[#allocation3 + $0x48] sm:$0xff] %vm525_vm0, %v3351_v42 }
  0x79   : > { %536 = vst.msk [vmem:[#allocation3 + $0x50] sm:$0xff] %vm525_vm0, %v3351_v42  ;;  %537 = vst.msk [vmem:[#allocation3 + $0x58] sm:$0xff] %vm525_vm0, %v3351_v42 }
  0x7a   : > { %538 = vst.msk [vmem:[#allocation3 + $0x60] sm:$0xff] %vm525_vm0, %v3351_v42  ;;  %539 = vst.msk [vmem:[#allocation3 + $0x68] sm:$0xff] %vm525_vm0, %v3351_v42 }
  0x7b   : > { %540 = vst.msk [vmem:[#allocation3 + $0x70] sm:$0xff] %vm525_vm0, %v3351_v42  ;;  %541 = vst.msk [vmem:[#allocation3 + $0x78] sm:$0xff] %vm525_vm0, %v3351_v42 }
  0x7c   : > { %542 = vst.msk [vmem:[#allocation3 + $0x80] sm:$0xff] %vm525_vm0, %v3351_v42  ;;  %543 = vst.msk [vmem:[#allocation3 + $0x88] sm:$0xff] %vm525_vm0, %v3351_v42 }
  0x7d   : > { %544 = vst.msk [vmem:[#allocation3 + $0x90] sm:$0xff] %vm525_vm0, %v3351_v42  ;;  %545 = vst.msk [vmem:[#allocation3 + $0x98] sm:$0xff] %vm525_vm0, %v3351_v42 }
  0x7e   : > { %546 = vst.msk [vmem:[#allocation3 + $0xa0] sm:$0xff] %vm525_vm0, %v3351_v42  ;;  %547 = vst.msk [vmem:[#allocation3 + $0xa8] sm:$0xff] %vm525_vm0, %v3351_v42 }
  0x7f   : > { %548 = vst.msk [vmem:[#allocation3 + $0xb0] sm:$0xff] %vm525_vm0, %v3351_v42  ;;  %549 = vst.msk [vmem:[#allocation3 + $0xb8] sm:$0xff] %vm525_vm0, %v3351_v42 }
  0x80   : > { %550 = vst.msk [vmem:[#allocation3 + $0xc0] sm:$0xff] %vm525_vm0, %v3351_v42  ;;  %551 = vst.msk [vmem:[#allocation3 + $0xc8] sm:$0xff] %vm525_vm0, %v3351_v42 }
  0x81   : > { %552 = vst.msk [vmem:[#allocation3 + $0xd0] sm:$0xff] %vm525_vm0, %v3351_v42  ;;  %553 = vst.msk [vmem:[#allocation3 + $0xd8] sm:$0xff] %vm525_vm0, %v3351_v42 }
  0x82   : > { %554 = vst.msk [vmem:[#allocation3 + $0xe0] sm:$0xff] %vm525_vm0, %v3351_v42  ;;  %555 = vst.msk [vmem:[#allocation3 + $0xe8] sm:$0xff] %vm525_vm0, %v3351_v42 }
  0x83   : > { %556 = vst.msk [vmem:[#allocation3 + $0xf0] sm:$0xff] %vm525_vm0, %v3351_v42  ;;  %557 = vst.msk [vmem:[#allocation3 + $0xf8] sm:$0xff] %vm525_vm0, %v3351_v42 }
  0x84 PF: > { %v2701_v43 = vld [vmem:[%s3612_s13 + $0x80] sm:$0xff]  ;;  %s2683_s16 = sshll.u32 %s3333_s22, 8  ;;  %v3352_v45 = vmov 0   ;;  %v2702_v46 = vld [vmem:[%s3612_s13 + $0x88] sm:$0xff]  ;;  %v633_v48 = vld [vmem:[%s3612_s13 + $0x18] sm:$0xff]  ;;  %vm1074_vm1 = vcmask 7168  }
  0x85   : > { %v630_v44 = vld [vmem:[%s3612_s13] sm:$0xff]  ;;  %3024 = vset.pattern.permute.xlu1 %v3352_v45  ;;  %3023 = vset.pattern.permute.xlu0 %v3352_v45  ;;  %s1092_s18 = sshra.s32 %s2683_s16, 3  ;;  %v631_v47 = vld [vmem:[%s3612_s13 + $0x8] sm:$0xff]  ;;  %v632_v49 = vld [vmem:[%s3612_s13 + $0x10] sm:$0xff]  ;;  %p2767_p8 = scmp.ne.s32.totalorder %s3333_s22, 1 }
  0x86   : > { %1406 = vperm.xlu1 %3024, %v2701_v43   ;;  %649 = vperm.xlu0 %3023, %v630_v44   ;;  %s2684_s28 = sshll.u32 %s1092_s18, 2  ;;  %v2704_v50 = vld [vmem:[%s3612_s13 + $0x98] sm:$0xff]  ;;  %v2703_v51 = vld [vmem:[%s3612_s13 + $0x90] sm:$0xff]  ;;  %v635_v55 = vld [vmem:[%s3612_s13 + $0x28] sm:$0xff]  ;;  %v728_v44 = vlaneseq }
  0x87   : > { %s3726_s9 = scalar_lea.vmem %s4399_s2, %s2684_s28  ;;  %v634_v57 = vld [vmem:[%s3612_s13 + $0x20] sm:$0xff]  ;;  %v2706_v59 = vld [vmem:[%s3612_s13 + $0xa8] sm:$0xff]  ;;  %v637_v1 = vld [vmem:[%s3612_s13 + $0x38] sm:$0xff] }
  0x88   : > { %v3025_v52 = vld [vmem:[%s3726_s9 + $0x40] sm:$0xff]   ;;  %v3029_v58 = vld [vmem:[%s3726_s9 + $0x48] sm:$0xff]   ;;  %v3033_v0 = vld [vmem:[%s3726_s9 + $0x50] sm:$0xff]   ;;  %v729_v45 = vshrl.u32 %v728_v44, 7 }
  0x89   : > { %v3026_v53 = vld [vmem:[%s3726_s9 + $0x140] sm:$0xff]   ;;  %2776 = vmatprep.subr.bf16.mxu0 %v3025_v52  ;;  %v3030_v61 = vld [vmem:[%s3726_s9 + $0x148] sm:$0xff]   ;;  %v636_v2 = vld [vmem:[%s3612_s13 + $0x30] sm:$0xff] }
  0x8a   : > { %1411 = vperm.xlu1 %3024, %v2702_v46   ;;  %654 = vperm.xlu0 %3023, %v631_v47   ;;  %v3027_v54 = vld [vmem:[%s3726_s9] sm:$0xff]   ;;  %v3031_v62 = vld [vmem:[%s3726_s9 + $0x8] sm:$0xff]   ;;  %v3034_v3 = vld [vmem:[%s3726_s9 + $0x150] sm:$0xff]  }
  0x8b   : > { %v3028_v56 = vld [vmem:[%s3726_s9 + $0x100] sm:$0xff]   ;;  %2840 = vmatprep.subr.bf16.mxu1 %v3026_v53  ;;  %2777 = vmatpush3.bf16.msra.mxu0 %v3027_v54  ;;  %v3032_v63 = vld [vmem:[%s3726_s9 + $0x108] sm:$0xff]   ;;  %v3035_v4 = vld [vmem:[%s3726_s9 + $0x10] sm:$0xff]  }
  0x8c   : > { %2841 = vmatpush3.bf16.msra.mxu1 %v3028_v56  ;;  %v2705_v60 = vld [vmem:[%s3612_s13 + $0xa0] sm:$0xff]  ;;  %2778 = vmatprep.subr.bf16.mxu0 %v3029_v58  ;;  %v3036_v5 = vld [vmem:[%s3726_s9 + $0x110] sm:$0xff]   ;;  %v3037_v6 = vld [vmem:[%s3726_s9 + $0x58] sm:$0xff]  }
  0x8d   : > { %2842 = vmatprep.subr.bf16.mxu1 %v3030_v61  ;;  %v2708_v7 = vld [vmem:[%s3612_s13 + $0xb8] sm:$0xff]  ;;  %v2707_v8 = vld [vmem:[%s3612_s13 + $0xb0] sm:$0xff]  ;;  %v3041_v12 = vld [vmem:[%s3726_s9 + $0x60] sm:$0xff]  }
  0x8e   : > { %664 = vperm.xlu1 %3024, %v633_v48   ;;  %659 = vperm.xlu0 %3023, %v632_v49   ;;  %v3038_v9 = vld [vmem:[%s3726_s9 + $0x158] sm:$0xff]   ;;  %v639_v13 = vld [vmem:[%s3612_s13 + $0x48] sm:$0xff]  ;;  %v638_v14 = vld [vmem:[%s3612_s13 + $0x40] sm:$0xff]  ;;  %v730_v48 = vsub.s32 0, %v729_v45  ;;  %v734_v49 = vsub.s32 1, %v729_v45 }
  0x8f   : > { %2779 = vmatpush3.bf16.msra.mxu0 %v3031_v62  ;;  %v3039_v10 = vld [vmem:[%s3726_s9 + $0x18] sm:$0xff]   ;;  %v3042_v15 = vld [vmem:[%s3726_s9 + $0x160] sm:$0xff]   ;;  %v3045_v18 = vld [vmem:[%s3726_s9 + $0x68] sm:$0xff]  }
  0x90   : > { %2843 = vmatpush3.bf16.msra.mxu1 %v3032_v63  ;;  %2780 = vmatprep.subr.bf16.mxu0 %v3033_v0  ;;  %v3040_v11 = vld [vmem:[%s3726_s9 + $0x118] sm:$0xff]   ;;  %v3043_v16 = vld [vmem:[%s3726_s9 + $0x20] sm:$0xff]   ;;  %v2710_v19 = vld [vmem:[%s3612_s13 + $0xc8] sm:$0xff] }
  0x91   : > { %2844 = vmatprep.subr.bf16.mxu1 %v3034_v3  ;;  %v3044_v17 = vld [vmem:[%s3726_s9 + $0x120] sm:$0xff]   ;;  %v3046_v21 = vld [vmem:[%s3726_s9 + $0x168] sm:$0xff]   ;;  %v641_v24 = vld [vmem:[%s3612_s13 + $0x58] sm:$0xff] }
  0x92   : > { %1421 = vperm.xlu1 %3024, %v2704_v50   ;;  %1416 = vperm.xlu0 %3023, %v2703_v51   ;;  %v2709_v20 = vld [vmem:[%s3612_s13 + $0xc0] sm:$0xff]  ;;  %v3047_v22 = vld [vmem:[%s3726_s9 + $0x28] sm:$0xff]   ;;  %v640_v25 = vld [vmem:[%s3612_s13 + $0x50] sm:$0xff] }
  0x93   : > { %2781 = vmatpush3.bf16.msra.mxu0 %v3035_v4  ;;  %v3048_v23 = vld [vmem:[%s3726_s9 + $0x128] sm:$0xff]   ;;  %v3049_v26 = vld [vmem:[%s3726_s9 + $0x70] sm:$0xff]   ;;  %v2712_v30 = vld [vmem:[%s3612_s13 + $0xd8] sm:$0xff] }
  0x94   : > { %2845 = vmatpush3.bf16.msra.mxu1 %v3036_v5  ;;  %2782 = vmatprep.subr.bf16.mxu0 %v3037_v6  ;;  %v3050_v27 = vld [vmem:[%s3726_s9 + $0x170] sm:$0xff]   ;;  %v643_v32 = vld [vmem:[%s3612_s13 + $0x68] sm:$0xff]  ;;  %v642_v33 = vld [vmem:[%s3612_s13 + $0x60] sm:$0xff] }
  0x95   : > { %2846 = vmatprep.subr.bf16.mxu1 %v3038_v9  ;;  %v3051_v28 = vld [vmem:[%s3726_s9 + $0x30] sm:$0xff]   ;;  %v2714_v34 = vld [vmem:[%s3612_s13 + $0xe8] sm:$0xff]  ;;  %v2713_v35 = vld [vmem:[%s3612_s13 + $0xe0] sm:$0xff] }
  0x96   : > { %674 = vperm.xlu1 %3024, %v635_v55   ;;  %669 = vperm.xlu0 %3023, %v634_v57   ;;  %v3052_v29 = vld [vmem:[%s3726_s9 + $0x130] sm:$0xff]   ;;  %v3053_v36 = vld [vmem:[%s3726_s9 + $0x78] sm:$0xff]   ;;  %v558_v46 = vld [vmem:[%s3615_s27] sm:$0xff] }
  0x97   : > { %2783 = vmatpush3.bf16.msra.mxu0 %v3039_v10  ;;  %v2711_v31 = vld [vmem:[%s3612_s13 + $0xd0] sm:$0xff]  ;;  %v3054_v37 = vld [vmem:[%s3726_s9 + $0x178] sm:$0xff]   ;;  %v2717_v50 = vld [vmem:[%s445_s6 + $0x2] sm:$0x3]  ;;  %v566_v52 = vunpack.c.0.s8 %v558_v46  ;;  %v568_v55 = vunpack.c.1.s8 %v558_v46  ;;  %v570_v4 = vunpack.c.2.s8 %v558_v46  ;;  %v572_v5 = vunpack.c.3.s8 %v558_v46 }
  0x98   : > { %2847 = vmatpush3.bf16.msra.mxu1 %v3040_v11  ;;  %2784 = vmatprep.subr.bf16.mxu0 %v3041_v12  ;;  %v3055_v38 = vld [vmem:[%s3726_s9 + $0x38] sm:$0xff]   ;;  %v644_v41 = vld [vmem:[%s3612_s13 + $0x70] sm:$0xff]  ;;  %v646_v51 = vld [vmem:[%s445_s6] sm:$0x3]  ;;  %v3792_v56 = vrot.slane %v2717_v50, %v730_v48  ;;  %v3794_v57 = vrot.slane %v2717_v50, %v734_v49 }
  0x99   : > { %2848 = vmatprep.subr.bf16.mxu1 %v3042_v15  ;;  %v3056_v39 = vld [vmem:[%s3726_s9 + $0x138] sm:$0xff]   ;;  %v2715_v43 = vld [vmem:[%s3612_s13 + $0xf0] sm:$0xff]  ;;  %v3796_v58 = vrot.slane %v646_v51, %v730_v48  ;;  %v561_v61 = vld [vmem:[%s3615_s27 + $0x18] sm:$0xff]  ;;  %v3802_v62 = vcvt.s32.f32 %v566_v52 }
  0x9a   : > { %1431 = vperm.xlu1 %3024, %v2706_v59   ;;  %1426 = vperm.xlu0 %3023, %v2705_v60   ;;  %v645_v40 = vld [vmem:[%s3612_s13 + $0x78] sm:$0xff]  ;;  %v559_v47 = vld [vmem:[%s3615_s27 + $0x8] sm:$0xff]  ;;  %v3798_v59 = vrot.slane %v646_v51, %v734_v49  ;;  %v3811_v6 = vld [vmem:[%s3615_s27 + $0x20] sm:$0xff]  ;;  %v575_v9 = vunpack.c.0.s8 %v561_v61  ;;  %v577_v10 = vunpack.c.1.s8 %v561_v61 }
  0x9b   : > { %2785 = vmatpush3.bf16.msra.mxu0 %v3043_v16  ;;  %v2716_v42 = vld [vmem:[%s3612_s13 + $0xf8] sm:$0xff]  ;;  %v567_v53 = vunpack.c.0.s8 %v559_v47  ;;  %v569_v54 = vunpack.c.1.s8 %v559_v47  ;;  %v573_v3 = vunpack.c.3.s8 %v559_v47  ;;  %4425 = vst [vmem:[#allocation17_spill] sm:$0xff] %v3811_v6  ;;  %v582_v16 = vunpack.c.0.s8 %v3811_v6 }
  0x9c   : > { %2849 = vmatpush3.bf16.msra.mxu1 %v3044_v17  ;;  %2786 = vmatprep.subr.bf16.mxu0 %v3045_v18  ;;  %v560_v60 = vld [vmem:[%s3615_s27 + $0x10] sm:$0xff] }
  0x9d   : > { %2850 = vmatprep.subr.bf16.mxu1 %v3046_v21  ;;  %v3804_v63 = vcvt.s32.f32 %v567_v53  ;;  %v3806_v0 = vcvt.s32.f32 %v569_v54  ;;  %v576_v11 = vunpack.c.1.s8 %v560_v60  ;;  %v578_v12 = vunpack.c.2.s8 %v560_v60 }
  0x9e   : > { %684 = vperm.xlu1 %3024, %v637_v1   ;;  %679 = vperm.xlu0 %3023, %v636_v2   ;;  %v3808_v1 = vcvt.s32.f32 %v568_v55  ;;  %v571_v2 = vunpack.c.2.s8 %v559_v47  ;;  %v580_v15 = vunpack.c.3.s8 %v560_v60  ;;  %v3822_v21 = vcvt.s32.f32 %v573_v3 }
  0x9f   : > { %2787 = vmatpush3.bf16.msra.mxu0 %v3047_v22  ;;  %v3824_v22 = vcvt.s32.f32 %v570_v4 }
  0xa0   : > { %2851 = vmatpush3.bf16.msra.mxu1 %v3048_v23  ;;  %2788 = vmatprep.subr.bf16.mxu0 %v3049_v26  ;;  %v3826_v23 = vcvt.s32.f32 %v572_v5  ;;  %v3832_v26 = vcvt.s32.f32 %v577_v10 }
  0xa1   : > { %2852 = vmatprep.subr.bf16.mxu1 %v3050_v27  ;;  %v3834_v27 = vcvt.s32.f32 %v576_v11 }
  0xa2   : > { %1441 = vperm.xlu1 %3024, %v2708_v7   ;;  %1436 = vperm.xlu0 %3023, %v2707_v8   ;;  %v3814_v7 = vld [vmem:[%s3615_s27 + $0x28] sm:$0xff]  ;;  %v574_v8 = vunpack.c.0.s8 %v560_v60 }
  0xa3   : > { %2789 = vmatpush3.bf16.msra.mxu0 %v3051_v28  ;;  %4426 = vst [vmem:[#allocation18_spill] sm:$0xff] %v3814_v7  ;;  %v583_v17 = vunpack.c.0.s8 %v3814_v7  ;;  %v585_v18 = vunpack.c.1.s8 %v3814_v7  ;;  %v3836_v28 = vcvt.s32.f32 %v578_v12 }
  0xa4   : > { %2853 = vmatpush3.bf16.msra.mxu1 %v3052_v29  ;;  %2790 = vmatprep.subr.bf16.mxu0 %v3053_v36 }
  0xa5   : > { %2854 = vmatprep.subr.bf16.mxu1 %v3054_v37  ;;  %v3848_v36 = vcvt.s32.f32 %v585_v18 }
  0xa6   : > { %694 = vperm.xlu1 %3024, %v639_v13   ;;  %689 = vperm.xlu0 %3023, %v638_v14   ;;  %v579_v13 = vunpack.c.2.s8 %v561_v61  ;;  %v581_v14 = vunpack.c.3.s8 %v561_v61 }
  0xa7   : > { %2791 = vmatpush3.bf16.msra.mxu0 %v3055_v38  ;;  %4428 = vst [vmem:[#allocation20_spill] sm:$0xff] %v3848_v36 }
  0xa8   : > { %2855 = vmatpush3.bf16.msra.mxu1 %v3056_v39  ;;  %v3838_v29 = vcvt.s32.f32 %v579_v13 }
  0xaa   : > { %1451 = vperm.xlu1 %3024, %v2710_v19   ;;  %1446 = vperm.xlu0 %3023, %v2709_v20   ;;  %v584_v19 = vunpack.c.1.s8 %v3811_v6  ;;  %v3820_v20 = vcvt.s32.f32 %v571_v2 }
  0xac   : > { %v3850_v37 = vcvt.s32.f32 %v584_v19 }
  0xae   : > { %704 = vperm.xlu1 %3024, %v641_v24   ;;  %699 = vperm.xlu0 %3023, %v640_v25   ;;  %v3828_v24 = vcvt.s32.f32 %v574_v8  ;;  %v3830_v25 = vcvt.s32.f32 %v575_v9  ;;  %4429 = vst [vmem:[#allocation21_spill] sm:$0xff] %v3850_v37 }
  0xb2   : > { %1461 = vperm.xlu1 %3024, %v2712_v30   ;;  %1456 = vperm.xlu0 %3023, %v2711_v31   ;;  %v3840_v30 = vcvt.s32.f32 %v581_v14  ;;  %v3842_v31 = vcvt.s32.f32 %v580_v15 }
  0xb6   : > { %714 = vperm.xlu1 %3024, %v643_v32   ;;  %709 = vperm.xlu0 %3023, %v642_v33  }
  0xba   : > { %1471 = vperm.xlu1 %3024, %v2714_v34   ;;  %1466 = vperm.xlu0 %3023, %v2713_v35   ;;  %v3844_v34 = vcvt.s32.f32 %v582_v16  ;;  %v3846_v35 = vcvt.s32.f32 %v583_v17 }
  0xbc   : > { %4427 = vst [vmem:[#allocation19_spill] sm:$0xff] %v3846_v35 }
  0xbe   : > { %724 = vperm.xlu1 %3024, %v645_v40   ;;  %719 = vperm.xlu0 %3023, %v644_v41  }
  0xc2   : > { %1481 = vperm.xlu1 %3024, %v2716_v42   ;;  %1476 = vperm.xlu0 %3023, %v2715_v43  }
 0x105   : > { %v1407_v32 = vpop.permute.xlu1 %1406  ;;  %v650_v33 = vpop.permute.xlu0 %649 }
 0x106   : > { %v1495_v38 = vadd.f32 %v3792_v56, %v1407_v32  ;;  %v1496_v39 = vadd.f32 %v3794_v57, %v1407_v32  ;;  %v738_v40 = vadd.f32 %v3796_v58, %v650_v33  ;;  %v739_v41 = vadd.f32 %v3798_v59, %v650_v33 }
 0x108   : > { %v1527_v46 = vsub.f32 0.0, %v1495_v38  ;;  %v1528_v47 = vsub.f32 0.0, %v1496_v39  ;;  %v1559_v48 = vmul.f32 -0.2, %v1495_v38  ;;  %v1560_v49 = vmul.f32 -0.2, %v1496_v39 }
 0x109   : > { %v770_v50 = vsub.f32 0.0, %v738_v40  ;;  %v771_v51 = vsub.f32 0.0, %v739_v41  ;;  %v802_v52 = vmul.f32 -0.2, %v738_v40  ;;  %v803_v53 = vmul.f32 -0.2, %v739_v41  ;;  %v1412_v54 = vpop.permute.xlu1 %1411  ;;  %v655_v55 = vpop.permute.xlu0 %654 }
 0x10a   : > { %v1591_v60 = vmin.f32 %v1527_v46, %v1559_v48  ;;  %v1592_v61 = vmin.f32 %v1528_v47, %v1560_v49  ;;  %v1497_v2 = vadd.f32 %v3792_v56, %v1412_v54  ;;  %v1498_v3 = vadd.f32 %v3794_v57, %v1412_v54 }
 0x10b   : > { %v834_v4 = vmin.f32 %v770_v50, %v802_v52  ;;  %v835_v5 = vmin.f32 %v771_v51, %v803_v53  ;;  %v740_v8 = vadd.f32 %v3796_v58, %v655_v55  ;;  %v741_v9 = vadd.f32 %v3798_v59, %v655_v55 }
 0x10c   : > { %v1623_v10 = vmin.f32 %v1591_v60, 80.0  ;;  %v1624_v11 = vmin.f32 %v1592_v61, 80.0  ;;  %v1529_v12 = vsub.f32 0.0, %v1497_v2  ;;  %v1530_v13 = vsub.f32 0.0, %v1498_v3 }
 0x10d   : > { %v866_v14 = vmin.f32 %v834_v4, 80.0  ;;  %v867_v15 = vmin.f32 %v835_v5, 80.0  ;;  %v1561_v16 = vmul.f32 -0.2, %v1497_v2  ;;  %v1562_v17 = vmul.f32 -0.2, %v1498_v3  ;;  %v665_v18 = vpop.permute.xlu1 %664  ;;  %v660_v60 = vpop.permute.xlu0 %659 }
 0x10e   : > { %v1655_v19 = vmul.f32 1.442695, %v1623_v10  ;;  %v1657_v32 = vmul.f32 1.442695, %v1624_v11  ;;  %v772_v33 = vsub.f32 0.0, %v740_v8  ;;  %v773_v38 = vsub.f32 0.0, %v741_v9 }
 0x10f   : > { %v898_v39 = vmul.f32 1.442695, %v866_v14  ;;  %v900_v40 = vmul.f32 1.442695, %v867_v15  ;;  %v1593_v41 = vmin.f32 %v1529_v12, %v1561_v16  ;;  %v1594_v46 = vmin.f32 %v1530_v13, %v1562_v17 }
 0x110   : > { %3057 = vpow2.f32 %v1655_v19  ;;  %v804_v47 = vmul.f32 -0.2, %v740_v8  ;;  %v805_v48 = vmul.f32 -0.2, %v741_v9  ;;  %v744_v49 = vadd.f32 %v3796_v58, %v665_v18 }
 0x111   : > { %3059 = vpow2.f32 %v1657_v32  ;;  %v1625_v50 = vmin.f32 %v1593_v41, 80.0  ;;  %v1626_v51 = vmin.f32 %v1594_v46, 80.0  ;;  %v745_v52 = vadd.f32 %v3798_v59, %v665_v18  ;;  %v1422_v61 = vpop.permute.xlu1 %1421 }
 0x112   : > { %3061 = vpow2.f32 %v898_v39  ;;  %v836_v53 = vmin.f32 %v772_v33, %v804_v47  ;;  %v837_v54 = vmin.f32 %v773_v38, %v805_v48  ;;  %v776_v55 = vsub.f32 0.0, %v744_v49 }
 0x113   : > { %3063 = vpow2.f32 %v900_v40  ;;  %v1659_v2 = vmul.f32 1.442695, %v1625_v50  ;;  %v1661_v3 = vmul.f32 1.442695, %v1626_v51  ;;  %v777_v4 = vsub.f32 0.0, %v745_v52  ;;  %v1417_v40 = vpop.permute.xlu0 %1416 }
 0x114   : > { %v868_v5 = vmin.f32 %v836_v53, 80.0  ;;  %v869_v8 = vmin.f32 %v837_v54, 80.0  ;;  %v808_v9 = vmul.f32 -0.2, %v744_v49  ;;  %v809_v10 = vmul.f32 -0.2, %v745_v52 }
 0x115   : > { %3065 = vpow2.f32 %v1659_v2  ;;  %v742_v11 = vadd.f32 %v3796_v58, %v660_v60  ;;  %v743_v12 = vadd.f32 %v3798_v59, %v660_v60  ;;  %v1501_v13 = vadd.f32 %v3792_v56, %v1422_v61 }
 0x116   : > { %3067 = vpow2.f32 %v1661_v3  ;;  %v902_v14 = vmul.f32 1.442695, %v868_v5  ;;  %v904_v15 = vmul.f32 1.442695, %v869_v8  ;;  %v840_v16 = vmin.f32 %v776_v55, %v808_v9  ;;  %v675_v3 = vpop.permute.xlu1 %674 }
 0x117   : > { %v841_v17 = vmin.f32 %v777_v4, %v809_v10  ;;  %v774_v18 = vsub.f32 0.0, %v742_v11  ;;  %v775_v19 = vsub.f32 0.0, %v743_v12  ;;  %v806_v32 = vmul.f32 -0.2, %v742_v11 }
 0x118   : > { %3069 = vpow2.f32 %v902_v14  ;;  %v872_v33 = vmin.f32 %v840_v16, 80.0  ;;  %v807_v38 = vmul.f32 -0.2, %v743_v12  ;;  %v1502_v39 = vadd.f32 %v3794_v57, %v1422_v61 }
 0x119   : > { %3071 = vpow2.f32 %v904_v15  ;;  %v873_v41 = vmin.f32 %v841_v17, 80.0  ;;  %v838_v46 = vmin.f32 %v774_v18, %v806_v32  ;;  %v1533_v47 = vsub.f32 0.0, %v1501_v13 }
 0x11a   : > { %v3870_v48 = vpop.eup %3057  ;;  %v910_v49 = vmul.f32 1.442695, %v872_v33  ;;  %v839_v50 = vmin.f32 %v775_v19, %v807_v38  ;;  %v1534_v51 = vsub.f32 0.0, %v1502_v39  ;;  %v1565_v52 = vmul.f32 -0.2, %v1501_v13 }
 0x11b   : > { %v3872_v53 = vpop.eup %3059  ;;  %v912_v54 = vmul.f32 1.442695, %v873_v41  ;;  %v870_v55 = vmin.f32 %v838_v46, 80.0  ;;  %v1566_v60 = vmul.f32 -0.2, %v1502_v39  ;;  %v1499_v2 = vadd.f32 %v3792_v56, %v1417_v40  ;;  %v670_v41 = vpop.permute.xlu0 %669 }
 0x11c   : > { %v3875_v61 = vpop.eup %3061  ;;  %3073 = vpow2.f32 %v910_v49  ;;  %v871_v4 = vmin.f32 %v839_v50, 80.0  ;;  %v1597_v5 = vmin.f32 %v1533_v47, %v1565_v52  ;;  %v1500_v8 = vadd.f32 %v3794_v57, %v1417_v40 }
 0x11d   : > { %v3878_v9 = vpop.eup %3063  ;;  %3075 = vpow2.f32 %v912_v54  ;;  %v906_v10 = vmul.f32 1.442695, %v870_v55  ;;  %v1598_v11 = vmin.f32 %v1534_v51, %v1566_v60  ;;  %v1531_v12 = vsub.f32 0.0, %v1499_v2  ;;  %v1432_v51 = vpop.permute.xlu1 %1431 }
 0x11e   : > { %v908_v13 = vmul.f32 1.442695, %v871_v4  ;;  %v1629_v14 = vmin.f32 %v1597_v5, 80.0  ;;  %v1532_v15 = vsub.f32 0.0, %v1500_v8  ;;  %v1563_v16 = vmul.f32 -0.2, %v1499_v2 }
 0x11f   : > { %v3880_v17 = vpop.eup %3065  ;;  %3077 = vpow2.f32 %v906_v10  ;;  %v1630_v18 = vmin.f32 %v1598_v11, 80.0  ;;  %v1564_v19 = vmul.f32 -0.2, %v1500_v8  ;;  %v748_v32 = vadd.f32 %v3796_v58, %v675_v3 }
 0x120   : > { %v3883_v33 = vpop.eup %3067  ;;  %3079 = vpow2.f32 %v908_v13  ;;  %v1667_v38 = vmul.f32 1.442695, %v1629_v14  ;;  %v1595_v39 = vmin.f32 %v1531_v12, %v1563_v16  ;;  %v749_v40 = vadd.f32 %v3798_v59, %v675_v3 }
 0x121   : > { %v1669_v46 = vmul.f32 1.442695, %v1630_v18  ;;  %v1596_v47 = vmin.f32 %v1532_v15, %v1564_v19  ;;  %v780_v49 = vsub.f32 0.0, %v748_v32  ;;  %v812_v50 = vmul.f32 -0.2, %v748_v32 }
 0x122   : > { %v3886_v52 = vpop.eup %3069  ;;  %3081 = vpow2.f32 %v1667_v38  ;;  %v1627_v54 = vmin.f32 %v1595_v39, 80.0  ;;  %v781_v55 = vsub.f32 0.0, %v749_v40  ;;  %v813_v60 = vmul.f32 -0.2, %v749_v40 }
 0x123   : > { %v3888_v2 = vpop.eup %3071  ;;  %3083 = vpow2.f32 %v1669_v46  ;;  %v1628_v4 = vmin.f32 %v1596_v47, 80.0  ;;  %v844_v5 = vmin.f32 %v780_v49, %v812_v50  ;;  %v746_v8 = vadd.f32 %v3796_v58, %v670_v41 }
 0x124   : > { %v1663_v3 = vmul.f32 1.442695, %v1627_v54  ;;  %v845_v10 = vmin.f32 %v781_v55, %v813_v60  ;;  %v747_v11 = vadd.f32 %v3798_v59, %v670_v41  ;;  %v1505_v12 = vadd.f32 %v3792_v56, %v1432_v51  ;;  %v1427_v41 = vpop.permute.xlu0 %1426  ;;  %v685_v60 = vpop.permute.xlu1 %684 }
 0x125   : > { %v1665_v13 = vmul.f32 1.442695, %v1628_v4  ;;  %v876_v14 = vmin.f32 %v844_v5, 80.0  ;;  %v778_v15 = vsub.f32 0.0, %v746_v8  ;;  %v810_v16 = vmul.f32 -0.2, %v746_v8 }
 0x126   : > { %v3893_v18 = vpop.eup %3073  ;;  %3085 = vpow2.f32 %v1663_v3  ;;  %v877_v19 = vmin.f32 %v845_v10, 80.0  ;;  %v779_v32 = vsub.f32 0.0, %v747_v11  ;;  %v811_v38 = vmul.f32 -0.2, %v747_v11 }
 0x127   : > { %v3895_v39 = vpop.eup %3075  ;;  %3087 = vpow2.f32 %v1665_v13  ;;  %v918_v40 = vmul.f32 1.442695, %v876_v14  ;;  %v842_v46 = vmin.f32 %v778_v15, %v810_v16  ;;  %v1506_v47 = vadd.f32 %v3794_v57, %v1432_v51 }
 0x128   : > { %v920_v49 = vmul.f32 1.442695, %v877_v19  ;;  %v843_v50 = vmin.f32 %v779_v32, %v811_v38  ;;  %v1537_v54 = vsub.f32 0.0, %v1505_v12  ;;  %v1569_v55 = vmul.f32 -0.2, %v1505_v12 }
 0x129   : > { %v3898_v4 = vpop.eup %3077  ;;  %3089 = vpow2.f32 %v918_v40  ;;  %v874_v5 = vmin.f32 %v842_v46, 80.0  ;;  %v1538_v8 = vsub.f32 0.0, %v1506_v47  ;;  %v1570_v3 = vmul.f32 -0.2, %v1506_v47 }
 0x12a   : > { %v3900_v10 = vpop.eup %3079  ;;  %3091 = vpow2.f32 %v920_v49  ;;  %v875_v11 = vmin.f32 %v843_v50, 80.0  ;;  %v1601_v13 = vmin.f32 %v1537_v54, %v1569_v55  ;;  %v1503_v14 = vadd.f32 %v3792_v56, %v1427_v41 }
 0x12b   : > { %v914_v51 = vmul.f32 1.442695, %v874_v5  ;;  %v1602_v15 = vmin.f32 %v1538_v8, %v1570_v3  ;;  %v1504_v16 = vadd.f32 %v3794_v57, %v1427_v41  ;;  %v752_v12 = vadd.f32 %v3796_v58, %v685_v60  ;;  %v680_v41 = vpop.permute.xlu0 %679 }
 0x12c   : > { %v3905_v19 = vpop.eup %3081  ;;  %v916_v32 = vmul.f32 1.442695, %v875_v11  ;;  %v1633_v38 = vmin.f32 %v1601_v13, 80.0  ;;  %v1535_v40 = vsub.f32 0.0, %v1503_v14  ;;  %v1567_v46 = vmul.f32 -0.2, %v1503_v14 }
 0x12d   : > { %v3907_v47 = vpop.eup %3083  ;;  %3093 = vpow2.f32 %v914_v51  ;;  %v1634_v49 = vmin.f32 %v1602_v15, 80.0  ;;  %v1536_v50 = vsub.f32 0.0, %v1504_v16  ;;  %v1568_v54 = vmul.f32 -0.2, %v1504_v16 }
 0x12e   : > { %3095 = vpow2.f32 %v916_v32  ;;  %v1675_v55 = vmul.f32 1.442695, %v1633_v38  ;;  %v1599_v5 = vmin.f32 %v1535_v40, %v1567_v46  ;;  %v753_v8 = vadd.f32 %v3798_v59, %v685_v60 }
 0x12f   : > { %v1677_v3 = vmul.f32 1.442695, %v1634_v49  ;;  %v1600_v45 = vmin.f32 %v1536_v50, %v1568_v54  ;;  %v784_v44 = vsub.f32 0.0, %v752_v12  ;;  %v816_v43 = vmul.f32 -0.2, %v752_v12 }
 0x130   : > { %v3910_v11 = vpop.eup %3085  ;;  %3097 = vpow2.f32 %v1675_v55  ;;  %v1631_v13 = vmin.f32 %v1599_v5, 80.0  ;;  %v785_v14 = vsub.f32 0.0, %v753_v8  ;;  %v817_v42 = vmul.f32 -0.2, %v753_v8  ;;  %v1442_v5 = vpop.permute.xlu1 %1441 }
 0x131   : > { %v3912_v51 = vpop.eup %3087  ;;  %3099 = vpow2.f32 %v1677_v3  ;;  %v1632_v15 = vmin.f32 %v1600_v45, 80.0  ;;  %v848_v16 = vmin.f32 %v784_v44, %v816_v43  ;;  %v750_v32 = vadd.f32 %v3796_v58, %v680_v41 }
 0x132   : > { %v1671_v38 = vmul.f32 1.442695, %v1631_v13  ;;  %v849_v60 = vmin.f32 %v785_v14, %v817_v42  ;;  %v751_v40 = vadd.f32 %v3798_v59, %v680_v41  ;;  %v3918_v12 = vmul.f32 %v3875_v61, %v3802_v62  ;;  %v1437_v42 = vpop.permute.xlu0 %1436 }
 0x133   : > { %v3920_v46 = vpop.eup %3089  ;;  %v1673_v49 = vmul.f32 1.442695, %v1632_v15  ;;  %v880_v50 = vmin.f32 %v848_v16, 80.0  ;;  %v782_v54 = vsub.f32 0.0, %v750_v32  ;;  %v814_v55 = vmul.f32 -0.2, %v750_v32 }
 0x134   : > { %v3922_v8 = vpop.eup %3091  ;;  %3101 = vpow2.f32 %v1671_v38  ;;  %v881_v43 = vmin.f32 %v849_v60, 80.0  ;;  %v783_v44 = vsub.f32 0.0, %v751_v40  ;;  %v815_v45 = vmul.f32 -0.2, %v751_v40 }
 0x135   : > { %3103 = vpow2.f32 %v1673_v49  ;;  %v926_v41 = vmul.f32 1.442695, %v880_v50  ;;  %v846_v3 = vmin.f32 %v782_v54, %v814_v55  ;;  %v963_v61 = vmul.f32 %v3878_v9, %v3804_v63 }
 0x136   : > { %v928_v13 = vmul.f32 1.442695, %v881_v43  ;;  %v847_v14 = vmin.f32 %v783_v44, %v815_v45  ;;  %v1509_v15 = vadd.f32 %v3792_v56, %v1442_v5  ;;  %v1510_v16 = vadd.f32 %v3794_v57, %v1442_v5 }
 0x137   : > { %v3928_v32 = vpop.eup %3093  ;;  %3105 = vpow2.f32 %v926_v41  ;;  %v878_v38 = vmin.f32 %v846_v3, 80.0  ;;  %v1010_v60 = vadd.f32 %v963_v61, %v3918_v12  ;;  %v1507_v40 = vadd.f32 %v3792_v56, %v1437_v42 }
 0x138   : > { %v3932_v49 = vpop.eup %3095  ;;  %3107 = vpow2.f32 %v928_v13  ;;  %v879_v50 = vmin.f32 %v847_v14, 80.0  ;;  %v1541_v54 = vsub.f32 0.0, %v1509_v15  ;;  %v1542_v9 = vsub.f32 0.0, %v1510_v16 }
 0x139   : > { %v922_v55 = vmul.f32 1.442695, %v878_v38  ;;  %1011 = vadd.xlane.f32.xlu0 %v1010_v60  ;;  %v1573_v43 = vmul.f32 -0.2, %v1509_v15  ;;  %v1574_v44 = vmul.f32 -0.2, %v1510_v16  ;;  %v1508_v5 = vadd.f32 %v3794_v57, %v1437_v42 }
 0x13a   : > { %v3935_v45 = vpop.eup %3097  ;;  %v924_v41 = vmul.f32 1.442695, %v879_v50  ;;  %v1539_v3 = vsub.f32 0.0, %v1507_v40  ;;  %v1571_v7 = vmul.f32 -0.2, %v1507_v40  ;;  %v965_v6 = vmul.f32 %v3888_v2, %v3806_v0  ;;  %v695_v2 = vpop.permute.xlu1 %694 }
 0x13b   : > { %v3939_v37 = vpop.eup %3099  ;;  %3109 = vpow2.f32 %v922_v55  ;;  %v1605_v13 = vmin.f32 %v1541_v54, %v1573_v43  ;;  %v1606_v14 = vmin.f32 %v1542_v9, %v1574_v44  ;;  %v1540_v36 = vsub.f32 0.0, %v1508_v5 }
 0x13c   : > { %3111 = vpow2.f32 %v924_v41  ;;  %v1572_v38 = vmul.f32 -0.2, %v1508_v5  ;;  %v1603_v15 = vmin.f32 %v1539_v3, %v1571_v7  ;;  %v1145_v16 = vpack.c.bf16 %v965_v6, %v963_v61 }
 0x13d   : > { %v1637_v60 = vmin.f32 %v1605_v13, 80.0  ;;  %v1638_v42 = vmin.f32 %v1606_v14, 80.0  ;;  %v3943_v50 = vmul.f32 %v3872_v53, %v3804_v63  ;;  %v3947_v40 = vmul.f32 %v3883_v33, %v3806_v0 }
 0x13e   : > { %v3949_v35 = vpop.eup %3101  ;;  %v1604_v54 = vmin.f32 %v1540_v36, %v1572_v38  ;;  %v1635_v9 = vmin.f32 %v1603_v15, 80.0  ;;  %1288 = vmatprep.mubr.bf16.mxu0 %v1145_v16  ;;  %v964_v7 = vmul.f32 %v3886_v52, %v3808_v1  ;;  %v3955_v61 = vmul.f32 %v3870_v48, %v3802_v62  ;;  %v690_v36 = vpop.permute.xlu0 %689 }
 0x13f   : > { %4430 = vst [vmem:[#allocation22_spill] sm:$0xff] %v3947_v40  ;;  %v3957_v55 = vpop.eup %3103  ;;  %v1683_v63 = vmul.f32 1.442695, %v1637_v60  ;;  %v1685_v53 = vmul.f32 1.442695, %v1638_v42  ;;  %v1901_v0 = vpack.c.bf16 %v3947_v40, %v3943_v50  ;;  %v3963_v33 = vmul.f32 %v3880_v17, %v3808_v1  ;;  %v1452_v15 = vpop.permute.xlu1 %1451 }
 0x140   : > { %v1636_v43 = vmin.f32 %v1604_v54, 80.0  ;;  %v1679_v44 = vmul.f32 1.442695, %v1635_v9  ;;  %v1013_v5 = vadd.f32 %v965_v6, %v964_v7  ;;  %v1144_v52 = vpack.c.bf16 %v964_v7, %v3918_v12 }
 0x141   : > { %v3966_v41 = vpop.eup %3105  ;;  %3113 = vpow2.f32 %v1683_v63  ;;  %2044 = vmatprep.mubr.bf16.mxu1 %v1901_v0  ;;  %v1900_v62 = vpack.c.bf16 %v3963_v33, %v3955_v61  ;;  %v756_v48 = vadd.f32 %v3796_v58, %v695_v2  ;;  %v757_v3 = vadd.f32 %v3798_v59, %v695_v2 }
 0x142   : > { %v3972_v13 = vpop.eup %3107  ;;  %3115 = vpow2.f32 %v1685_v53  ;;  %v1681_v1 = vmul.f32 1.442695, %v1636_v43  ;;  %1014 = vadd.xlane.f32.xlu1 %v1013_v5  ;;  %1289 = vmatmul.mubr.bf16.vlgmr.msra.gmra.mrb[0].mxu0 %v1144_v52  ;;  %v754_v6 = vadd.f32 %v3796_v58, %v690_v36  ;;  %v755_v17 = vadd.f32 %v3798_v59, %v690_v36 }
 0x143   : > { %3117 = vpow2.f32 %v1679_v44  ;;  %2045 = vmatmul.mubr.bf16.vlgmr.msra.gmra.mrb[0].mxu1 %v1900_v62  ;;  %v788_v12 = vsub.f32 0.0, %v756_v48  ;;  %v789_v14 = vsub.f32 0.0, %v757_v3  ;;  %v820_v38 = vmul.f32 -0.2, %v756_v48 }
 0x144   : > { %3119 = vpow2.f32 %v1681_v1  ;;  %v821_v16 = vmul.f32 -0.2, %v757_v3  ;;  %v786_v60 = vsub.f32 0.0, %v754_v6  ;;  %v787_v42 = vsub.f32 0.0, %v755_v17  ;;  %v1447_v3 = vpop.permute.xlu0 %1446 }
 0x145   : > { %v3976_v2 = vpop.eup %3109  ;;  %v852_v54 = vmin.f32 %v788_v12, %v820_v38  ;;  %v818_v9 = vmul.f32 -0.2, %v754_v6  ;;  %v819_v7 = vmul.f32 -0.2, %v755_v17  ;;  %v967_v63 = vmul.f32 %v3900_v10, %v3820_v20 }
 0x146   : > { %v3980_v53 = vpop.eup %3111  ;;  %v853_v0 = vmin.f32 %v789_v14, %v821_v16  ;;  %v969_v36 = vmul.f32 %v3895_v39, %v3822_v21  ;;  %v3986_v43 = vmul.f32 %v3898_v4, %v3824_v22  ;;  %v1513_v44 = vadd.f32 %v3792_v56, %v1452_v15 }
 0x147   : > { %v884_v5 = vmin.f32 %v852_v54, 80.0  ;;  %v850_v52 = vmin.f32 %v786_v60, %v818_v9  ;;  %v851_v62 = vmin.f32 %v787_v42, %v819_v7  ;;  %v1514_v48 = vadd.f32 %v3794_v57, %v1452_v15 }
 0x148   : > { %v885_v1 = vmin.f32 %v853_v0, 80.0  ;;  %v1147_v10 = vpack.c.bf16 %v969_v36, %v967_v63  ;;  %v1016_v6 = vadd.f32 %v967_v63, %v3986_v43  ;;  %v1545_v17 = vsub.f32 0.0, %v1513_v44 }
 0x149   : > { %v934_v12 = vmul.f32 1.442695, %v884_v5  ;;  %v882_v14 = vmin.f32 %v850_v52, 80.0  ;;  %v883_v39 = vmin.f32 %v851_v62, 80.0  ;;  %v1546_v38 = vsub.f32 0.0, %v1514_v48 }
 0x14a   : > { %v936_v16 = vmul.f32 1.442695, %v885_v1  ;;  %1296 = vmatprep.mubr.bf16.mxu0 %v1147_v10  ;;  %1017 = vadd.xlane.f32.xlu0 %v1016_v6  ;;  %v1577_v4 = vmul.f32 -0.2, %v1513_v44  ;;  %v1578_v40 = vmul.f32 -0.2, %v1514_v48  ;;  %v1511_v60 = vadd.f32 %v3792_v56, %v1447_v3 }
 0x14b   : > { %v3992_v42 = vpop.eup %3113  ;;  %3121 = vpow2.f32 %v934_v12  ;;  %v930_v15 = vmul.f32 1.442695, %v882_v14  ;;  %v932_v54 = vmul.f32 1.442695, %v883_v39  ;;  %v1512_v9 = vadd.f32 %v3794_v57, %v1447_v3  ;;  %v705_v39 = vpop.permute.xlu1 %704 }
 0x14c   : > { %v3995_v7 = vpop.eup %3115  ;;  %3123 = vpow2.f32 %v936_v16  ;;  %v1609_v63 = vmin.f32 %v1545_v17, %v1577_v4  ;;  %v1610_v0 = vmin.f32 %v1546_v38, %v1578_v40  ;;  %v1543_v5 = vsub.f32 0.0, %v1511_v60 }
 0x14d   : > { %v3997_v52 = vpop.eup %3117  ;;  %3125 = vpow2.f32 %v930_v15  ;;  %v1544_v44 = vsub.f32 0.0, %v1512_v9  ;;  %v1575_v62 = vmul.f32 -0.2, %v1511_v60  ;;  %v1576_v48 = vmul.f32 -0.2, %v1512_v9  ;;  %v700_v15 = vpop.permute.xlu0 %699 }
 0x14e   : > { %v3999_v1 = vpop.eup %3119  ;;  %3127 = vpow2.f32 %v932_v54  ;;  %v1641_v10 = vmin.f32 %v1609_v63, 80.0  ;;  %v1642_v6 = vmin.f32 %v1610_v0, 80.0  ;;  %v4003_v3 = vmul.f32 %v3912_v51, %v3820_v20 }
 0x14f   : > { %v1607_v12 = vmin.f32 %v1543_v5, %v1575_v62  ;;  %v1608_v14 = vmin.f32 %v1544_v44, %v1576_v48  ;;  %v4007_v40 = vmul.f32 %v3907_v47, %v3822_v21  ;;  %v968_v17 = vmul.f32 %v3893_v18, %v3826_v23  ;;  %v1462_v48 = vpop.permute.xlu1 %1461 }
 0x150   : > { %v1691_v38 = vmul.f32 1.442695, %v1641_v10  ;;  %v1693_v16 = vmul.f32 1.442695, %v1642_v6  ;;  %v4013_v4 = vmul.f32 %v3910_v11, %v3824_v22  ;;  %v4017_v20 = vmul.f32 %v3905_v19, %v3826_v23 }
 0x151   : > { %v1639_v51 = vmin.f32 %v1607_v12, 80.0  ;;  %v1640_v60 = vmin.f32 %v1608_v14, 80.0  ;;  %v1903_v21 = vpack.c.bf16 %v4007_v40, %v4003_v3  ;;  %v1019_v47 = vadd.f32 %v969_v36, %v968_v17 }
 0x152   : > { %3129 = vpow2.f32 %v1691_v38  ;;  %v1146_v18 = vpack.c.bf16 %v968_v17, %v3986_v43  ;;  %v1902_v54 = vpack.c.bf16 %v4017_v20, %v4013_v4  ;;  %v760_v22 = vadd.f32 %v3796_v58, %v705_v39 }
 0x153   : > { %3131 = vpow2.f32 %v1693_v16  ;;  %v1687_v11 = vmul.f32 1.442695, %v1639_v51  ;;  %v1689_v9 = vmul.f32 1.442695, %v1640_v60  ;;  %2052 = vmatprep.mubr.bf16.mxu1 %v1903_v21  ;;  %1020 = vadd.xlane.f32.xlu0 %v1019_v47  ;;  %v761_v23 = vadd.f32 %v3798_v59, %v705_v39 }
 0x154   : > { %1297 = vmatmul.mubr.bf16.gmra.mrb[4].mxu0 %v1146_v18  ;;  %2053 = vmatmul.mubr.bf16.gmra.mrb[4].mxu1 %v1902_v54  ;;  %v792_v19 = vsub.f32 0.0, %v760_v22  ;;  %v824_v36 = vmul.f32 -0.2, %v760_v22  ;;  %v758_v63 = vadd.f32 %v3796_v58, %v700_v15  ;;  %v759_v43 = vadd.f32 %v3798_v59, %v700_v15 }
 0x155   : > { %v4028_v0 = vpop.eup %3121  ;;  %3133 = vpow2.f32 %v1687_v11  ;;  %v793_v5 = vsub.f32 0.0, %v761_v23  ;;  %v825_v44 = vmul.f32 -0.2, %v761_v23  ;;  %v4032_v62 = vmul.f32 %v3928_v32, %v3828_v24 }
 0x156   : > { %v4034_v10 = vpop.eup %3123  ;;  %3135 = vpow2.f32 %v1689_v9  ;;  %v856_v6 = vmin.f32 %v792_v19, %v824_v36  ;;  %v790_v12 = vsub.f32 0.0, %v758_v63  ;;  %v791_v14 = vsub.f32 0.0, %v759_v43  ;;  %v1457_v36 = vpop.permute.xlu0 %1456 }
 0x157   : > { %v4036_v17 = vpop.eup %3125  ;;  %v857_v39 = vmin.f32 %v793_v5, %v825_v44  ;;  %v822_v38 = vmul.f32 -0.2, %v758_v63  ;;  %v823_v16 = vmul.f32 -0.2, %v759_v43  ;;  %v971_v51 = vmul.f32 %v3932_v49, %v3830_v25 }
 0x158   : > { %v4040_v60 = vpop.eup %3127  ;;  %v888_v21 = vmin.f32 %v856_v6, 80.0  ;;  %v973_v32 = vmul.f32 %v3922_v8, %v3832_v26  ;;  %v972_v47 = vmul.f32 %v3920_v46, %v3834_v27  ;;  %v1517_v15 = vadd.f32 %v3792_v56, %v1462_v48 }
 0x159   : > { %v889_v18 = vmin.f32 %v857_v39, 80.0  ;;  %v854_v54 = vmin.f32 %v790_v12, %v822_v38  ;;  %v855_v22 = vmin.f32 %v791_v14, %v823_v16  ;;  %v1022_v11 = vadd.f32 %v971_v51, %v4032_v62 }
 0x15a   : > { %v942_v9 = vmul.f32 1.442695, %v888_v21  ;;  %v1149_v23 = vpack.c.bf16 %v973_v32, %v971_v51  ;;  %v1025_v19 = vadd.f32 %v973_v32, %v972_v47  ;;  %v1518_v49 = vadd.f32 %v3794_v57, %v1462_v48 }
 0x15b   : > { %v944_v63 = vmul.f32 1.442695, %v889_v18  ;;  %v886_v43 = vmin.f32 %v854_v54, 80.0  ;;  %v887_v5 = vmin.f32 %v855_v22, 80.0  ;;  %1023 = vadd.xlane.f32.xlu1 %v1022_v11  ;;  %v1549_v8 = vsub.f32 0.0, %v1517_v15 }
 0x15c   : > { %v4049_v44 = vpop.eup %3129  ;;  %3137 = vpow2.f32 %v942_v9  ;;  %1304 = vmatprep.mubr.bf16.mxu0 %v1149_v23  ;;  %1026 = vadd.xlane.f32.xlu0 %v1025_v19  ;;  %v1550_v46 = vsub.f32 0.0, %v1518_v49  ;;  %v1581_v6 = vmul.f32 -0.2, %v1517_v15  ;;  %v1582_v12 = vmul.f32 -0.2, %v1518_v49  ;;  %v715_v49 = vpop.permute.xlu1 %714 }
 0x15d   : > { %v4051_v14 = vpop.eup %3131  ;;  %3139 = vpow2.f32 %v944_v63  ;;  %v938_v39 = vmul.f32 1.442695, %v886_v43  ;;  %v940_v38 = vmul.f32 1.442695, %v887_v5  ;;  %v1515_v48 = vadd.f32 %v3792_v56, %v1457_v36  ;;  %v710_v43 = vpop.permute.xlu0 %709 }
 0x15e   : > { %v1613_v16 = vmin.f32 %v1549_v8, %v1581_v6  ;;  %v1614_v51 = vmin.f32 %v1550_v46, %v1582_v12  ;;  %v1516_v21 = vadd.f32 %v3794_v57, %v1457_v36  ;;  %v4057_v32 = vmul.f32 %v3957_v55, %v3830_v25 }
 0x15f   : > { %v4059_v18 = vpop.eup %3133  ;;  %3141 = vpow2.f32 %v938_v39  ;;  %v1547_v15 = vsub.f32 0.0, %v1515_v48  ;;  %v1579_v54 = vmul.f32 -0.2, %v1515_v48  ;;  %v4063_v22 = vmul.f32 %v3939_v37, %v3832_v26 }
 0x160   : > { %v4065_v11 = vpop.eup %3135  ;;  %3143 = vpow2.f32 %v940_v38  ;;  %v1645_v9 = vmin.f32 %v1613_v16, 80.0  ;;  %v1646_v23 = vmin.f32 %v1614_v51, 80.0  ;;  %v1548_v19 = vsub.f32 0.0, %v1516_v21 }
 0x161   : > { %v1580_v36 = vmul.f32 -0.2, %v1516_v21  ;;  %v1611_v63 = vmin.f32 %v1547_v15, %v1579_v54  ;;  %v1905_v25 = vpack.c.bf16 %v4063_v22, %v4057_v32  ;;  %v1148_v55 = vpack.c.bf16 %v972_v47, %v4032_v62 }
 0x162   : > { %v1699_v5 = vmul.f32 1.442695, %v1645_v9  ;;  %v1701_v8 = vmul.f32 1.442695, %v1646_v23  ;;  %v4072_v26 = vmul.f32 %v3949_v35, %v3828_v24  ;;  %v4076_v37 = vmul.f32 %v3935_v45, %v3834_v27 }
 0x163   : > { %v1612_v46 = vmin.f32 %v1548_v19, %v1580_v36  ;;  %v1643_v6 = vmin.f32 %v1611_v63, 80.0  ;;  %2060 = vmatprep.mubr.bf16.mxu1 %v1905_v25  ;;  %1305 = vmatmul.mubr.bf16.gmra.mrb[8].mxu0 %v1148_v55  ;;  %v764_v12 = vadd.f32 %v3796_v58, %v715_v49  ;;  %v765_v39 = vadd.f32 %v3798_v59, %v715_v49  ;;  %v1472_v25 = vpop.permute.xlu1 %1471 }
 0x164   : > { %3145 = vpow2.f32 %v1699_v5  ;;  %v1904_v62 = vpack.c.bf16 %v4076_v37, %v4072_v26  ;;  %v762_v47 = vadd.f32 %v3796_v58, %v710_v43  ;;  %v763_v24 = vadd.f32 %v3798_v59, %v710_v43 }
 0x165   : > { %3147 = vpow2.f32 %v1701_v8  ;;  %v1644_v35 = vmin.f32 %v1612_v46, 80.0  ;;  %v1695_v27 = vmul.f32 1.442695, %v1643_v6  ;;  %v796_v45 = vsub.f32 0.0, %v764_v12 }
 0x166   : > { %v4084_v38 = vpop.eup %3137  ;;  %2061 = vmatmul.mubr.bf16.gmra.mrb[8].mxu1 %v1904_v62  ;;  %v797_v48 = vsub.f32 0.0, %v765_v39  ;;  %v828_v16 = vmul.f32 -0.2, %v764_v12  ;;  %v829_v51 = vmul.f32 -0.2, %v765_v39  ;;  %v794_v21 = vsub.f32 0.0, %v762_v47 }
 0x167   : > { %v4086_v15 = vpop.eup %3139  ;;  %3149 = vpow2.f32 %v1695_v27  ;;  %v1697_v54 = vmul.f32 1.442695, %v1644_v35  ;;  %v795_v9 = vsub.f32 0.0, %v763_v24  ;;  %v826_v23 = vmul.f32 -0.2, %v762_v47  ;;  %v1467_v27 = vpop.permute.xlu0 %1466 }
 0x168   : > { %v860_v19 = vmin.f32 %v796_v45, %v828_v16  ;;  %v861_v49 = vmin.f32 %v797_v48, %v829_v51  ;;  %v827_v36 = vmul.f32 -0.2, %v763_v24  ;;  %v974_v63 = vmul.f32 %v3976_v2, %v3836_v28 }
 0x169   : > { %v4090_v55 = vpop.eup %3141  ;;  %3151 = vpow2.f32 %v1697_v54  ;;  %v858_v43 = vmin.f32 %v794_v21, %v826_v23  ;;  %v975_v5 = vmul.f32 %v3980_v53, %v3838_v29  ;;  %v977_v8 = vmul.f32 %v3972_v13, %v3840_v30 }
 0x16a   : > { %v4096_v46 = vpop.eup %3143  ;;  %v892_v6 = vmin.f32 %v860_v19, 80.0  ;;  %v893_v12 = vmin.f32 %v861_v49, 80.0  ;;  %v859_v39 = vmin.f32 %v795_v9, %v827_v36  ;;  %v976_v62 = vmul.f32 %v3966_v41, %v3842_v31 }
 0x16b   : > { %v890_v2 = vmin.f32 %v858_v43, 80.0  ;;  %v1028_v47 = vadd.f32 %v975_v5, %v974_v63  ;;  %v1151_v24 = vpack.c.bf16 %v977_v8, %v975_v5  ;;  %v1521_v35 = vadd.f32 %v3792_v56, %v1472_v25 }
 0x16c   : > { %v950_v45 = vmul.f32 1.442695, %v892_v6  ;;  %v952_v48 = vmul.f32 1.442695, %v893_v12  ;;  %v891_v53 = vmin.f32 %v859_v39, 80.0  ;;  %v1031_v16 = vadd.f32 %v977_v8, %v976_v62 }
 0x16d   : > { %v946_v51 = vmul.f32 1.442695, %v890_v2  ;;  %1029 = vadd.xlane.f32.xlu1 %v1028_v47  ;;  %1312 = vmatprep.mubr.bf16.mxu0 %v1151_v24  ;;  %v1522_v13 = vadd.f32 %v3794_v57, %v1472_v25  ;;  %v1553_v21 = vsub.f32 0.0, %v1521_v35  ;;  %v1585_v54 = vmul.f32 -0.2, %v1521_v35  ;;  %v725_v24 = vpop.permute.xlu1 %724 }
 0x16e   : > { %v4102_v9 = vpop.eup %3145  ;;  %3153 = vpow2.f32 %v950_v45  ;;  %v948_v41 = vmul.f32 1.442695, %v891_v53  ;;  %1032 = vadd.xlane.f32.xlu0 %v1031_v16  ;;  %v1519_v23 = vadd.f32 %v3792_v56, %v1467_v27  ;;  %v1520_v19 = vadd.f32 %v3794_v57, %v1467_v27 }
 0x16f   : > { %v4106_v49 = vpop.eup %3147  ;;  %3155 = vpow2.f32 %v952_v48  ;;  %v1554_v36 = vsub.f32 0.0, %v1522_v13  ;;  %v1586_v43 = vmul.f32 -0.2, %v1522_v13  ;;  %v1617_v5 = vmin.f32 %v1553_v21, %v1585_v54 }
 0x170   : > { %3157 = vpow2.f32 %v946_v51  ;;  %v1551_v8 = vsub.f32 0.0, %v1519_v23  ;;  %v1552_v25 = vsub.f32 0.0, %v1520_v19  ;;  %v1583_v6 = vmul.f32 -0.2, %v1519_v23 }
 0x171   : > { %v4108_v12 = vpop.eup %3149  ;;  %3159 = vpow2.f32 %v948_v41  ;;  %v1618_v39 = vmin.f32 %v1554_v36, %v1586_v43  ;;  %v1649_v2 = vmin.f32 %v1617_v5, 80.0  ;;  %v1584_v47 = vmul.f32 -0.2, %v1520_v19 }
 0x172   : > { %v1615_v35 = vmin.f32 %v1551_v8, %v1583_v6  ;;  %v4112_v27 = vmul.f32 %v3999_v1, %v3838_v29  ;;  %v4116_v45 = vmul.f32 %v3995_v7, %v3840_v30  ;;  %v1150_v48 = vpack.c.bf16 %v976_v62, %v974_v63  ;;  %v720_v62 = vpop.permute.xlu0 %719 }
 0x173   : > { %v4118_v53 = vpop.eup %3151  ;;  %v1650_v16 = vmin.f32 %v1618_v39, 80.0  ;;  %v1707_v51 = vmul.f32 1.442695, %v1649_v2  ;;  %v1616_v13 = vmin.f32 %v1552_v25, %v1584_v47  ;;  %v4122_v21 = vmul.f32 %v3997_v52, %v3836_v28  ;;  %v4431_v47 = vld [vmem:[#allocation19_spill] sm:$0xff] }
 0x174   : > { %v1647_v54 = vmin.f32 %v1615_v35, 80.0  ;;  %v1907_v41 = vpack.c.bf16 %v4116_v45, %v4112_v27  ;;  %1313 = vmatmul.mubr.bf16.gmra.mrb[12].mxu0 %v1150_v48  ;;  %v4128_v29 = vmul.f32 %v3992_v42, %v3842_v31  ;;  %v768_v30 = vadd.f32 %v3796_v58, %v725_v24  ;;  %v1482_v35 = vpop.permute.xlu1 %1481 }
 0x175   : > { %3161 = vpow2.f32 %v1707_v51  ;;  %v1709_v7 = vmul.f32 1.442695, %v1650_v16  ;;  %v1648_v1 = vmin.f32 %v1616_v13, 80.0  ;;  %v769_v63 = vadd.f32 %v3798_v59, %v725_v24 }
 0x176   : > { %v1703_v23 = vmul.f32 1.442695, %v1647_v54  ;;  %2068 = vmatprep.mubr.bf16.mxu1 %v1907_v41  ;;  %v1906_v28 = vpack.c.bf16 %v4128_v29, %v4122_v21  ;;  %v800_v52 = vsub.f32 0.0, %v768_v30  ;;  %v832_v19 = vmul.f32 -0.2, %v768_v30 }
 0x177   : > { %3163 = vpow2.f32 %v1709_v7  ;;  %v1705_v36 = vmul.f32 1.442695, %v1648_v1  ;;  %v801_v43 = vsub.f32 0.0, %v769_v63  ;;  %v833_v31 = vmul.f32 -0.2, %v769_v63  ;;  %v4432_v7 = vld [vmem:[#allocation20_spill] sm:$0xff] }
 0x178   : > { %v4134_v42 = vpop.eup %3153  ;;  %3165 = vpow2.f32 %v1703_v23  ;;  %2069 = vmatmul.mubr.bf16.gmra.mrb[12].mxu1 %v1906_v28  ;;  %v864_v5 = vmin.f32 %v800_v52, %v832_v19  ;;  %v766_v8 = vadd.f32 %v3796_v58, %v720_v62  ;;  %v767_v25 = vadd.f32 %v3798_v59, %v720_v62  ;;  %v4433_v62 = vld [vmem:[#allocation21_spill] sm:$0xff] }
 0x179   : > { %v4138_v6 = vpop.eup %3155  ;;  %3167 = vpow2.f32 %v1705_v36  ;;  %v865_v39 = vmin.f32 %v801_v43, %v833_v31  ;;  %v4142_v2 = vmul.f32 %v4036_v17, %v3844_v34  ;;  %v979_v24 = vmul.f32 %v4040_v60, %v4431_v47  ;;  %v1477_v43 = vpop.permute.xlu0 %1476 }
 0x17a   : > { %v4146_v48 = vpop.eup %3157  ;;  %v896_v16 = vmin.f32 %v864_v5, 80.0  ;;  %v798_v51 = vsub.f32 0.0, %v766_v8  ;;  %v799_v13 = vsub.f32 0.0, %v767_v25  ;;  %v830_v58 = vmul.f32 -0.2, %v766_v8 }
 0x17b   : > { %v4148_v54 = vpop.eup %3159  ;;  %v897_v59 = vmin.f32 %v865_v39, 80.0  ;;  %v831_v41 = vmul.f32 -0.2, %v767_v25  ;;  %v1034_v30 = vadd.f32 %v979_v24, %v4142_v2  ;;  %v981_v17 = vmul.f32 %v4034_v10, %v4432_v7 }
 0x17c   : > { %v958_v1 = vmul.f32 1.442695, %v896_v16  ;;  %v862_v63 = vmin.f32 %v798_v51, %v830_v58  ;;  %v980_v60 = vmul.f32 %v4028_v0, %v4433_v62  ;;  %v1525_v23 = vadd.f32 %v3792_v56, %v1482_v35 }
 0x17d   : > { %v960_v28 = vmul.f32 1.442695, %v897_v59  ;;  %v863_v52 = vmin.f32 %v799_v13, %v831_v41  ;;  %1035 = vadd.xlane.f32.xlu1 %v1034_v30  ;;  %v1153_v19 = vpack.c.bf16 %v981_v17, %v979_v24  ;;  %v1526_v36 = vadd.f32 %v3794_v57, %v1482_v35 }
 0x17e   : > { %3169 = vpow2.f32 %v958_v1  ;;  %v894_v31 = vmin.f32 %v862_v63, 80.0  ;;  %v1037_v5 = vadd.f32 %v981_v17, %v980_v60  ;;  %v1557_v8 = vsub.f32 0.0, %v1525_v23 }
 0x17f   : > { %v4157_v25 = vpop.eup %3161  ;;  %3171 = vpow2.f32 %v960_v28  ;;  %v895_v10 = vmin.f32 %v863_v52, 80.0  ;;  %1320 = vmatprep.mubr.bf16.mxu0 %v1153_v19  ;;  %v1558_v39 = vsub.f32 0.0, %v1526_v36  ;;  %v1589_v0 = vmul.f32 -0.2, %v1525_v23 }
 0x180   : > { %v954_v16 = vmul.f32 1.442695, %v894_v31  ;;  %1038 = vadd.xlane.f32.xlu0 %v1037_v5  ;;  %v1590_v51 = vmul.f32 -0.2, %v1526_v36  ;;  %v1523_v13 = vadd.f32 %v3792_v56, %v1477_v43  ;;  %v1524_v24 = vadd.f32 %v3794_v57, %v1477_v43 }
 0x181   : > { %v4161_v35 = vpop.eup %3163  ;;  %v956_v58 = vmul.f32 1.442695, %v895_v10  ;;  %v1621_v59 = vmin.f32 %v1557_v8, %v1589_v0  ;;  %v4165_v41 = vmul.f32 %v4065_v11, %v4431_v47  ;;  %v4169_v30 = vmul.f32 %v4051_v14, %v4432_v7  ;;  %v4434_v8 = vld [vmem:[#allocation17_spill] sm:$0xff]  ;;  %v4436_v0 = vld [vmem:[#allocation18_spill] sm:$0xff] }
 0x182   : > { %v4171_v17 = vpop.eup %3165  ;;  %3173 = vpow2.f32 %v954_v16  ;;  %v1622_v1 = vmin.f32 %v1558_v39, %v1590_v51  ;;  %v1555_v63 = vsub.f32 0.0, %v1523_v13  ;;  %v1556_v56 = vsub.f32 0.0, %v1524_v24 }
 0x183   : > { %v4173_v23 = vpop.eup %3167  ;;  %3175 = vpow2.f32 %v956_v58  ;;  %v1653_v57 = vmin.f32 %v1621_v59, 80.0  ;;  %v1587_v28 = vmul.f32 -0.2, %v1523_v13  ;;  %v1588_v52 = vmul.f32 -0.2, %v1524_v24  ;;  %v4200_v59 = vld [vmem:[%s3615_s27 + $0x30] sm:$0xff] }
 0x184   : > { %v1654_v19 = vmin.f32 %v1622_v1, 80.0  ;;  %v1909_v11 = vpack.c.bf16 %v4169_v30, %v4165_v41  ;;  %v1152_v47 = vpack.c.bf16 %v980_v60, %v4142_v2  ;;  %v4180_v14 = vmul.f32 %v4059_v18, %v3844_v34 }
 0x185   : > { %v1715_v7 = vmul.f32 1.442695, %v1653_v57  ;;  %v1619_v36 = vmin.f32 %v1555_v63, %v1587_v28  ;;  %v1620_v43 = vmin.f32 %v1556_v56, %v1588_v52  ;;  %v4184_v31 = vmul.f32 %v4049_v44, %v4433_v62 }
 0x186   : > { %v1717_v5 = vmul.f32 1.442695, %v1654_v19  ;;  %2076 = vmatprep.mubr.bf16.mxu1 %v1909_v11  ;;  %1321 = vmatmul.mubr.bf16.gmra.mrb[16].mxu0 %v1152_v47  ;;  %v4435_v10 = vunpack.c.2.s8 %v4434_v8  ;;  %v4437_v2 = vunpack.c.2.s8 %v4436_v0  ;;  %v4438_v34 = vunpack.c.3.s8 %v4436_v0  ;;  %v565_v19 = vld [vmem:[%s3615_s27 + $0x38] sm:$0xff] }
 0x187   : > { %3177 = vpow2.f32 %v1715_v7  ;;  %v1651_v16 = vmin.f32 %v1619_v36, 80.0  ;;  %v1652_v51 = vmin.f32 %v1620_v43, 80.0  ;;  %v1908_v44 = vpack.c.bf16 %v4184_v31, %v4180_v14 }
 0x188   : > { %v618_v39 = vcvt.s32.f32 %v4435_v10  ;;  %v619_v60 = vcvt.s32.f32 %v4437_v2  ;;  %v621_v18 = vcvt.s32.f32 %v4438_v34  ;;  %v4194_v62 = vpop.eup %3169  ;;  %3179 = vpow2.f32 %v1717_v5 }
 0x189   : > { %v3172_v1 = vpop.eup %3171  ;;  %v1711_v63 = vmul.f32 1.442695, %v1651_v16  ;;  %v1713_v56 = vmul.f32 1.442695, %v1652_v51  ;;  %2077 = vmatmul.mubr.bf16.gmra.mrb[16].mxu1 %v1908_v44  ;;  %v4439_v57 = vunpack.c.3.s8 %v4434_v8  ;;  %v590_v36 = vunpack.c.0.s8 %v4200_v59 }
 0x18a   : > { %v982_v13 = vmul.f32 %v4090_v55, %v618_v39  ;;  %v983_v24 = vmul.f32 %v4096_v46, %v619_v60  ;;  %v985_v58 = vmul.f32 %v4086_v15, %v621_v18  ;;  %v4205_v52 = vmul.f32 %v4118_v53, %v619_v60 }
 0x18b   : > { %v620_v28 = vcvt.s32.f32 %v4439_v57  ;;  %v4209_v55 = vmul.f32 %v4106_v49, %v621_v18  ;;  %v4212_v15 = vmul.f32 %v4108_v12, %v618_v39  ;;  %3181 = vpow2.f32 %v1711_v63 }
 0x18c   : > { %v1040_v11 = vadd.f32 %v983_v24, %v982_v13  ;;  %v1155_v47 = vpack.c.bf16 %v985_v58, %v983_v24  ;;  %v3174_v43 = vpop.eup %3173  ;;  %3183 = vpow2.f32 %v1713_v56  ;;  %v591_v49 = vunpack.c.0.s8 %v565_v19 }
 0x18d   : > { %v984_v46 = vmul.f32 %v4084_v38, %v620_v28  ;;  %v4216_v7 = vmul.f32 %v4102_v9, %v620_v28  ;;  %v1911_v53 = vpack.c.bf16 %v4209_v55, %v4205_v52  ;;  %v593_v5 = vunpack.c.1.s8 %v565_v19  ;;  %v3176_v8 = vpop.eup %3175 }
 0x18e   : > { %1041 = vadd.xlane.f32.xlu1 %v1040_v11  ;;  %1328 = vmatprep.mubr.bf16.mxu0 %v1155_v47  ;;  %v622_v39 = vcvt.s32.f32 %v590_v36  ;;  %v623_v9 = vcvt.s32.f32 %v591_v49  ;;  %v592_v2 = vunpack.c.1.s8 %v4200_v59  ;;  %v594_v60 = vunpack.c.2.s8 %v4200_v59 }
 0x18f   : > { %v1043_v12 = vadd.f32 %v985_v58, %v984_v46  ;;  %v1154_v10 = vpack.c.bf16 %v984_v46, %v982_v13  ;;  %v1910_v38 = vpack.c.bf16 %v4216_v7, %v4212_v15  ;;  %2084 = vmatprep.mubr.bf16.mxu1 %v1911_v53  ;;  %v625_v0 = vcvt.s32.f32 %v593_v5 }
 0x190   : > { %v986_v34 = vmul.f32 %v4146_v48, %v622_v39  ;;  %v4227_v18 = vmul.f32 %v4171_v17, %v622_v39  ;;  %v595_v16 = vunpack.c.2.s8 %v565_v19  ;;  %v597_v51 = vunpack.c.3.s8 %v565_v19 }
 0x191   : > { %1044 = vadd.xlane.f32.xlu0 %v1043_v12  ;;  %1329 = vmatmul.mubr.bf16.gmra.mrb[20].mxu0 %v1154_v10  ;;  %v987_v44 = vmul.f32 %v4148_v54, %v623_v9  ;;  %v989_v13 = vmul.f32 %v4138_v6, %v625_v0  ;;  %v624_v24 = vcvt.s32.f32 %v592_v2  ;;  %v4232_v58 = vmul.f32 %v4173_v23, %v623_v9  ;;  %v3178_v63 = vpop.eup %3177 }
 0x192   : > { %2085 = vmatmul.mubr.bf16.gmra.mrb[20].mxu1 %v1910_v38  ;;  %v4235_v56 = vmul.f32 %v4161_v35, %v625_v0  ;;  %v626_v57 = vcvt.s32.f32 %v594_v60  ;;  %v627_v48 = vcvt.s32.f32 %v595_v16  ;;  %v629_v28 = vcvt.s32.f32 %v597_v51  ;;  %v3180_v17 = vpop.eup %3179  ;;  %v4440_v51 = vld [vmem:[#allocation22_spill] sm:$0xff] }
 0x193   : > { %v1046_v11 = vadd.f32 %v987_v44, %v986_v34  ;;  %v1157_v47 = vpack.c.bf16 %v989_v13, %v987_v44  ;;  %v988_v19 = vmul.f32 %v4134_v42, %v624_v24  ;;  %v1745_v54 = vmul.f32 %v4157_v25, %v624_v24  ;;  %v999_v24 = vld [vmem:[#allocation3 + $0x28] sm:$0xff] }
 0x194   : > { %v1913_v6 = vpack.c.bf16 %v4235_v56, %v4232_v58  ;;  %v990_v23 = vmul.f32 %v3174_v43, %v626_v57  ;;  %v991_v46 = vmul.f32 %v3176_v8, %v627_v48  ;;  %v993_v36 = vmul.f32 %v3172_v1, %v629_v28 }
 0x195   : > { %1047 = vadd.xlane.f32.xlu1 %v1046_v11  ;;  %1336 = vmatprep.mubr.bf16.mxu0 %v1157_v47  ;;  %v1049_v35 = vadd.f32 %v989_v13, %v988_v19  ;;  %v1156_v53 = vpack.c.bf16 %v988_v19, %v986_v34  ;;  %v596_v49 = vunpack.c.3.s8 %v4200_v59  ;;  %v3182_v5 = vpop.eup %3181  ;;  %v1912_v12 = vpack.c.bf16 %v1745_v54, %v4227_v18  ;;  %v998_v13 = vld [vmem:[#allocation3 + $0x20] sm:$0xff] }
 0x196   : > { %2092 = vmatprep.mubr.bf16.mxu1 %v1913_v6  ;;  %v1052_v10 = vadd.f32 %v991_v46, %v990_v23  ;;  %v1159_v42 = vpack.c.bf16 %v993_v36, %v991_v46  ;;  %v1750_v38 = vmul.f32 %v3180_v17, %v629_v28  ;;  %v3184_v25 = vpop.eup %3183  ;;  %v1783_v1 = vadd.f32 %v4063_v22, %v4076_v37  ;;  %v1001_v28 = vld [vmem:[#allocation3 + $0x38] sm:$0xff]  ;;  %v1003_v46 = vld [vmem:[#allocation3 + $0x48] sm:$0xff] }
 0x197   : > { %1050 = vadd.xlane.f32.xlu0 %v1049_v35  ;;  %v628_v39 = vcvt.s32.f32 %v596_v49  ;;  %v1748_v43 = vmul.f32 %v3184_v25, %v627_v48  ;;  %v1747_v9 = vmul.f32 %v3182_v5, %v626_v57  ;;  %v1768_v60 = vadd.f32 %v3943_v50, %v3955_v61  ;;  %v1000_v48 = vld [vmem:[#allocation3 + $0x30] sm:$0xff]  ;;  %v1128_v5 = vld [vmem:[#allocation2] sm:$0xff] }
 0x198   : > { %v1771_v22 = vadd.f32 %v4440_v51, %v3963_v33  ;;  %v1774_v37 = vadd.f32 %v4003_v3, %v4013_v4  ;;  %v1780_v50 = vadd.f32 %v4057_v32, %v4072_v26  ;;  %v1786_v61 = vadd.f32 %v4112_v27, %v4122_v21  ;;  %v994_v21 = vld [vmem:[#allocation3] sm:$0xff]  ;;  %v1005_v51 = vld [vmem:[#allocation3 + $0x58] sm:$0xff] }
 0x199   : > { %1337 = vmatmul.mubr.bf16.gmra.mrb[24].mxu0 %v1156_v53  ;;  %1053 = vadd.xlane.f32.xlu1 %v1052_v10  ;;  %v992_v8 = vmul.f32 %v4194_v62, %v628_v39  ;;  %v1915_v59 = vpack.c.bf16 %v1750_v38, %v1748_v43  ;;  %v1749_v0 = vmul.f32 %v3178_v63, %v628_v39  ;;  %v1004_v10 = vld [vmem:[#allocation3 + $0x50] sm:$0xff] }
 0x19a   : > { %1344 = vmatprep.mubr.bf16.mxu0 %v1159_v42  ;;  %2093 = vmatmul.mubr.bf16.gmra.mrb[24].mxu1 %v1912_v12  ;;  %v1777_v62 = vadd.f32 %v4007_v40, %v4017_v20  ;;  %v1789_v33 = vadd.f32 %v4116_v45, %v4128_v29  ;;  %v1792_v3 = vadd.f32 %v4165_v41, %v4180_v14  ;;  %v1884_v42 = vld [vmem:[#allocation2 + $0x80] sm:$0xff] }
 0x19b   : > { %v1055_v2 = vadd.f32 %v993_v36, %v992_v8  ;;  %2100 = vmatprep.mubr.bf16.mxu1 %v1915_v59  ;;  %v1158_v34 = vpack.c.bf16 %v992_v8, %v990_v23  ;;  %v1914_v16 = vpack.c.bf16 %v1749_v0, %v1747_v9  ;;  %v1795_v40 = vadd.f32 %v4169_v30, %v4184_v31  ;;  %v995_v30 = vld [vmem:[#allocation3 + $0x8] sm:$0xff] }
 0x19c   : > { %v1798_v4 = vadd.f32 %v4205_v52, %v4212_v15  ;;  %v1801_v20 = vadd.f32 %v4209_v55, %v4216_v7  ;;  %v1804_v32 = vadd.f32 %v4232_v58, %v4227_v18  ;;  %v1807_v26 = vadd.f32 %v4235_v56, %v1745_v54  ;;  %v996_v52 = vld [vmem:[#allocation3 + $0x10] sm:$0xff]  ;;  %v997_v7 = vld [vmem:[#allocation3 + $0x18] sm:$0xff]  ;;  %v1002_v54 = vld [vmem:[#allocation3 + $0x40] sm:$0xff] }
 0x19d   : > { %1056 = vadd.xlane.f32.xlu0 %v1055_v2  ;;  %1769 = vadd.xlane.f32.xlu1 %v1768_v60  ;;  %v1810_v27 = vadd.f32 %v1748_v43, %v1747_v9  ;;  %v1813_v45 = vadd.f32 %v1750_v38, %v1749_v0  ;;  %v1129_v8 = vld [vmem:[#allocation2 + $0x8] sm:$0xff] }
 0x19e   : > { %v1885_v60 = vld [vmem:[#allocation2 + $0x88] sm:$0xff] }
 0x1a1   : > { %1345 = vmatmul.mubr.bf16.gmra.mrb[28].mxu0 %v1158_v34  ;;  %1772 = vadd.xlane.f32.xlu0 %v1771_v22 }
 0x1a2   : > { %1775 = vadd.xlane.f32.xlu1 %v1774_v37  ;;  %2101 = vmatmul.mubr.bf16.gmra.mrb[28].mxu1 %v1914_v16 }
 0x1a5   : > { %1778 = vadd.xlane.f32.xlu0 %v1777_v62 }
 0x1a6   : > { %1781 = vadd.xlane.f32.xlu1 %v1780_v50 }
 0x1a9   : > { %1784 = vadd.xlane.f32.xlu0 %v1783_v1 }
 0x1aa   : > { %1787 = vadd.xlane.f32.xlu1 %v1786_v61 }
 0x1ad   : > { %1790 = vadd.xlane.f32.xlu0 %v1789_v33 }
 0x1ae   : > { %1793 = vadd.xlane.f32.xlu1 %v1792_v3  ;;  %v1006_v3 = vld [vmem:[#allocation3 + $0x60] sm:$0xff] }
 0x1b1   : > { %1796 = vadd.xlane.f32.xlu0 %v1795_v40 }
 0x1b2   : > { %1799 = vadd.xlane.f32.xlu1 %v1798_v4  ;;  %v1007_v4 = vld [vmem:[#allocation3 + $0x68] sm:$0xff] }
 0x1b5   : > { %1802 = vadd.xlane.f32.xlu0 %v1801_v20 }
 0x1b6   : > { %1805 = vadd.xlane.f32.xlu1 %v1804_v32 }
 0x1b9   : > { %1808 = vadd.xlane.f32.xlu0 %v1807_v26  ;;  %v1008_v26 = vld [vmem:[#allocation3 + $0x70] sm:$0xff] }
 0x1ba   : > { %1811 = vadd.xlane.f32.xlu1 %v1810_v27 }
 0x1bd   : > { %1814 = vadd.xlane.f32.xlu0 %v1813_v45 }
 0x1c6   : > { %v1012_v29 = vpop.xlane.xlu0 %1011 }
 0x1c7   : > { %v1058_v41 = vadd.f32 %v1012_v29, %v994_v21  ;;  %v1009_v29 = vld [vmem:[#allocation3 + $0x78] sm:$0xff] }
 0x1c9   : > { %1075 = vst.msk [vmem:[#allocation3] sm:$0xff] %vm1074_vm1, %v1058_v41  ;;  %v1752_v41 = vld [vmem:[#allocation3 + $0x80] sm:$0xff] }
 0x1cf   : > { %v1015_v14 = vpop.xlane.xlu1 %1014 }
 0x1d0   : > { %v1059_v31 = vadd.f32 %v1015_v14, %v995_v30 }
 0x1d2   : > { %1076 = vst.msk [vmem:[#allocation3 + $0x8] sm:$0xff] %vm1074_vm1, %v1059_v31  ;;  %v1886_v31 = vld [vmem:[#allocation2 + $0x90] sm:$0xff] }
 0x1d7   : > { %v1018_v55 = vpop.xlane.xlu0 %1017 }
 0x1d8   : > { %v1060_v15 = vadd.f32 %v1018_v55, %v996_v52  ;;  %v1130_v55 = vld [vmem:[#allocation2 + $0x10] sm:$0xff] }
 0x1da   : > { %1077 = vst.msk [vmem:[#allocation3 + $0x10] sm:$0xff] %vm1074_vm1, %v1060_v15 }
 0x1e0   : > { %v1021_v18 = vpop.xlane.xlu0 %1020 }
 0x1e1   : > { %v1061_v44 = vadd.f32 %v1021_v18, %v997_v7 }
 0x1e3   : > { %1078 = vst.msk [vmem:[#allocation3 + $0x18] sm:$0xff] %vm1074_vm1, %v1061_v44 }
 0x1e8   : > { %v1024_v58 = vpop.xlane.xlu1 %1023 }
 0x1e9   : > { %v1062_v63 = vadd.f32 %v1024_v58, %v998_v13  ;;  %v1027_v56 = vpop.xlane.xlu0 %1026 }
 0x1ea   : > { %v1063_v57 = vadd.f32 %v1027_v56, %v999_v24 }
 0x1eb   : > { %1079 = vst.msk [vmem:[#allocation3 + $0x20] sm:$0xff] %vm1074_vm1, %v1062_v63  ;;  %v1753_v63 = vld [vmem:[#allocation3 + $0x88] sm:$0xff] }
 0x1ec   : > { %1080 = vst.msk [vmem:[#allocation3 + $0x28] sm:$0xff] %vm1074_vm1, %v1063_v57 }
 0x1fa   : > { %v1030_v17 = vpop.xlane.xlu1 %1029 }
 0x1fb   : > { %v1064_v11 = vadd.f32 %v1030_v17, %v1000_v48  ;;  %v1033_v47 = vpop.xlane.xlu0 %1032  ;;  %v1754_v48 = vld [vmem:[#allocation3 + $0x90] sm:$0xff] }
 0x1fc   : > { %v1065_v19 = vadd.f32 %v1033_v47, %v1001_v28 }
 0x1fd   : > { %1081 = vst.msk [vmem:[#allocation3 + $0x30] sm:$0xff] %vm1074_vm1, %v1064_v11  ;;  %v1131_v11 = vld [vmem:[#allocation2 + $0x18] sm:$0xff] }
 0x1fe   : > { %1082 = vst.msk [vmem:[#allocation3 + $0x38] sm:$0xff] %vm1074_vm1, %v1065_v19  ;;  %v1887_v19 = vld [vmem:[#allocation2 + $0x98] sm:$0xff] }
 0x20a   : > { %v1036_v6 = vpop.xlane.xlu1 %1035 }
 0x20b   : > { %v1066_v23 = vadd.f32 %v1036_v6, %v1002_v54 }
 0x20d   : > { %1083 = vst.msk [vmem:[#allocation3 + $0x40] sm:$0xff] %vm1074_vm1, %v1066_v23  ;;  %v1039_v36 = vpop.xlane.xlu0 %1038 }
 0x20e   : > { %v1067_v35 = vadd.f32 %v1039_v36, %v1003_v46 }
 0x210   : > { %1084 = vst.msk [vmem:[#allocation3 + $0x48] sm:$0xff] %vm1074_vm1, %v1067_v35 }
 0x215   : > { %v2792_v53 = vpop.f32.mrb[0].mxu0 }
 0x216   : > { %v2856_v49 = vpop.f32.mrb[0].mxu1  ;;  %v2793_v12 = vpop.f32.mrb[1].mxu0 }
 0x217   : > { %v2857_v38 = vpop.f32.mrb[1].mxu1  ;;  %v2794_v25 = vadd.f32 %v2793_v12, %v2792_v53  ;;  %v2795_v39 = vpop.f32.mrb[2].mxu0  ;;  %v1755_v12 = vld [vmem:[#allocation3 + $0x98] sm:$0xff] }
 0x218   : > { %v2858_v43 = vadd.f32 %v2857_v38, %v2856_v49  ;;  %v2859_v1 = vpop.f32.mrb[2].mxu1  ;;  %v2796_v59 = vpop.f32.mrb[3].mxu0 }
 0x219   : > { %v1353_v0 = vadd.f32 %v2794_v25, %v1128_v5  ;;  %v2797_v2 = vadd.f32 %v2796_v59, %v2795_v39  ;;  %v2860_v34 = vpop.f32.mrb[3].mxu1 }
 0x21a   : > { %v2109_v22 = vadd.f32 %v2858_v43, %v1884_v42  ;;  %v2861_v37 = vadd.f32 %v2860_v34, %v2859_v1  ;;  %v1757_v43 = vld [vmem:[#allocation3 + $0xa8] sm:$0xff]  ;;  %v1758_v1 = vld [vmem:[#allocation3 + $0xb0] sm:$0xff]  ;;  %v1760_v34 = vld [vmem:[#allocation3 + $0xc0] sm:$0xff] }
 0x21b   : > { %v1042_v9 = vpop.xlane.xlu1 %1041  ;;  %1369 = vst [vmem:[#allocation2] sm:$0xff] %v1353_v0  ;;  %v1354_v62 = vadd.f32 %v2797_v2, %v1129_v8 }
 0x21c   : > { %v1068_v16 = vadd.f32 %v1042_v9, %v1004_v10  ;;  %2125 = vst [vmem:[#allocation2 + $0x80] sm:$0xff] %v2109_v22  ;;  %v2110_v61 = vadd.f32 %v2861_v37, %v1885_v60  ;;  %v1756_v10 = vld [vmem:[#allocation3 + $0xa0] sm:$0xff]  ;;  %v1759_v60 = vld [vmem:[#allocation3 + $0xb8] sm:$0xff] }
 0x21d   : > { %1370 = vst [vmem:[#allocation2 + $0x8] sm:$0xff] %v1354_v62 }
 0x21e   : > { %1085 = vst.msk [vmem:[#allocation3 + $0x50] sm:$0xff] %vm1074_vm1, %v1068_v16  ;;  %v1045_v50 = vpop.xlane.xlu0 %1044  ;;  %2126 = vst [vmem:[#allocation2 + $0x88] sm:$0xff] %v2110_v61  ;;  %v1132_v16 = vld [vmem:[#allocation2 + $0x20] sm:$0xff] }
 0x21f   : > { %v1069_v33 = vadd.f32 %v1045_v50, %v1005_v51 }
 0x221   : > { %1086 = vst.msk [vmem:[#allocation3 + $0x58] sm:$0xff] %vm1074_vm1, %v1069_v33 }
 0x222   : > { %v1048_v40 = vpop.xlane.xlu1 %1047 }
 0x223   : > { %v1070_v20 = vadd.f32 %v1048_v40, %v1006_v3 }
 0x224   : > { %v1051_v32 = vpop.xlane.xlu0 %1050 }
 0x225   : > { %1087 = vst.msk [vmem:[#allocation3 + $0x60] sm:$0xff] %vm1074_vm1, %v1070_v20  ;;  %v1071_v27 = vadd.f32 %v1051_v32, %v1007_v4  ;;  %v1133_v4 = vld [vmem:[#allocation2 + $0x28] sm:$0xff] }
 0x226   : > { %v1054_v45 = vpop.xlane.xlu1 %1053  ;;  %v1761_v32 = vld [vmem:[#allocation3 + $0xc8] sm:$0xff] }
 0x227   : > { %1088 = vst.msk [vmem:[#allocation3 + $0x68] sm:$0xff] %vm1074_vm1, %v1071_v27  ;;  %v1072_v21 = vadd.f32 %v1054_v45, %v1008_v26  ;;  %v2798_v30 = vpop.f32.mrb[4].mxu0  ;;  %v2862_v14 = vpop.f32.mrb[4].mxu1  ;;  %v1762_v26 = vld [vmem:[#allocation3 + $0xd0] sm:$0xff]  ;;  %v1888_v27 = vld [vmem:[#allocation2 + $0xa0] sm:$0xff] }
 0x228   : > { %v2863_v52 = vpop.f32.mrb[5].mxu1  ;;  %v2799_v15 = vpop.f32.mrb[5].mxu0 }
 0x229   : > { %1089 = vst.msk [vmem:[#allocation3 + $0x70] sm:$0xff] %vm1074_vm1, %v1072_v21  ;;  %v2864_v44 = vadd.f32 %v2863_v52, %v2862_v14  ;;  %v2800_v13 = vadd.f32 %v2799_v15, %v2798_v30  ;;  %v2801_v56 = vpop.f32.mrb[6].mxu0  ;;  %v2865_v57 = vpop.f32.mrb[6].mxu1 }
 0x22a   : > { %v1057_v7 = vpop.xlane.xlu0 %1056  ;;  %v1770_v18 = vpop.xlane.xlu1 %1769 }
 0x22b   : > { %v1073_v24 = vadd.f32 %v1057_v7, %v1009_v29  ;;  %v1816_v58 = vadd.f32 %v1770_v18, %v1752_v41  ;;  %v2111_v28 = vadd.f32 %v2864_v44, %v1886_v31  ;;  %v1355_v17 = vadd.f32 %v2800_v13, %v1130_v55  ;;  %v2802_v47 = vpop.f32.mrb[7].mxu0  ;;  %v2866_v54 = vpop.f32.mrb[7].mxu1  ;;  %v1889_v7 = vld [vmem:[#allocation2 + $0xa8] sm:$0xff]  ;;  %v1763_v44 = vld [vmem:[#allocation3 + $0xd8] sm:$0xff]  ;;  %v1764_v13 = vld [vmem:[#allocation3 + $0xe0] sm:$0xff] }
 0x22c   : > { %v2803_v6 = vadd.f32 %v2802_v47, %v2801_v56  ;;  %v2867_v23 = vadd.f32 %v2866_v54, %v2865_v57 }
 0x22d   : > { %1090 = vst.msk [vmem:[#allocation3 + $0x78] sm:$0xff] %vm1074_vm1, %v1073_v24  ;;  %1832 = vst.msk [vmem:[#allocation3 + $0x80] sm:$0xff] %vm1074_vm1, %v1816_v58 }
 0x22e   : > { %v1773_v46 = vpop.xlane.xlu0 %1772  ;;  %2127 = vst [vmem:[#allocation2 + $0x90] sm:$0xff] %v2111_v28  ;;  %1371 = vst [vmem:[#allocation2 + $0x10] sm:$0xff] %v1355_v17  ;;  %v1356_v49 = vadd.f32 %v2803_v6, %v1131_v11  ;;  %v2112_v5 = vadd.f32 %v2867_v23, %v1887_v19  ;;  %v1765_v28 = vld [vmem:[#allocation3 + $0xe8] sm:$0xff]  ;;  %v1766_v17 = vld [vmem:[#allocation3 + $0xf0] sm:$0xff] }
 0x22f   : > { %v1776_v36 = vpop.xlane.xlu1 %1775  ;;  %v1817_v35 = vadd.f32 %v1773_v46, %v1753_v63  ;;  %v1767_v6 = vld [vmem:[#allocation3 + $0xf8] sm:$0xff]  ;;  %v1134_v46 = vld [vmem:[#allocation2 + $0x30] sm:$0xff] }
 0x230   : > { %v1818_v53 = vadd.f32 %v1776_v36, %v1754_v48  ;;  %1372 = vst [vmem:[#allocation2 + $0x18] sm:$0xff] %v1356_v49  ;;  %2128 = vst [vmem:[#allocation2 + $0x98] sm:$0xff] %v2112_v5 }
 0x231   : > { %1833 = vst.msk [vmem:[#allocation3 + $0x88] sm:$0xff] %vm1074_vm1, %v1817_v35 }
 0x232   : > { %1834 = vst.msk [vmem:[#allocation3 + $0x90] sm:$0xff] %vm1074_vm1, %v1818_v53  ;;  %v1779_v42 = vpop.xlane.xlu0 %1778 }
 0x233   : > { %v1782_v38 = vpop.xlane.xlu1 %1781  ;;  %v1819_v25 = vadd.f32 %v1779_v42, %v1755_v12  ;;  %v1135_v12 = vld [vmem:[#allocation2 + $0x38] sm:$0xff] }
 0x234   : > { %v1820_v39 = vadd.f32 %v1782_v38, %v1756_v10 }
 0x235   : > { %1835 = vst.msk [vmem:[#allocation3 + $0x98] sm:$0xff] %vm1074_vm1, %v1819_v25 }
 0x236   : > { %1836 = vst.msk [vmem:[#allocation3 + $0xa0] sm:$0xff] %vm1074_vm1, %v1820_v39  ;;  %v1785_v8 = vpop.xlane.xlu0 %1784  ;;  %v2804_v2 = vpop.f32.mrb[8].mxu0  ;;  %v1890_v39 = vld [vmem:[#allocation2 + $0xb0] sm:$0xff] }
 0x237   : > { %v1788_v59 = vpop.xlane.xlu1 %1787  ;;  %v1821_v9 = vadd.f32 %v1785_v8, %v1757_v43  ;;  %v2805_v51 = vpop.f32.mrb[9].mxu0 }
 0x238   : > { %v1822_v0 = vadd.f32 %v1788_v59, %v1758_v1  ;;  %v2806_v22 = vadd.f32 %v2805_v51, %v2804_v2  ;;  %v2807_v37 = vpop.f32.mrb[10].mxu0  ;;  %v1136_v51 = vld [vmem:[#allocation2 + $0x40] sm:$0xff] }
 0x239   : > { %1837 = vst.msk [vmem:[#allocation3 + $0xa8] sm:$0xff] %vm1074_vm1, %v1821_v9  ;;  %v2868_v3 = vpop.f32.mrb[8].mxu1  ;;  %v2808_v20 = vpop.f32.mrb[11].mxu0  ;;  %v1891_v9 = vld [vmem:[#allocation2 + $0xb8] sm:$0xff] }
 0x23a   : > { %1838 = vst.msk [vmem:[#allocation3 + $0xb0] sm:$0xff] %vm1074_vm1, %v1822_v0  ;;  %v1791_v62 = vpop.xlane.xlu0 %1790  ;;  %v1357_v40 = vadd.f32 %v2806_v22, %v1132_v16  ;;  %v2869_v45 = vpop.f32.mrb[9].mxu1  ;;  %v2809_v21 = vadd.f32 %v2808_v20, %v2807_v37 }
 0x23b   : > { %v1794_v50 = vpop.xlane.xlu1 %1793  ;;  %v1823_v61 = vadd.f32 %v1791_v62, %v1759_v60  ;;  %v2870_v29 = vadd.f32 %v2869_v45, %v2868_v3  ;;  %v2871_v41 = vpop.f32.mrb[10].mxu1  ;;  %v1893_v45 = vld [vmem:[#allocation2 + $0xc8] sm:$0xff] }
 0x23c   : > { %v1824_v33 = vadd.f32 %v1794_v50, %v1760_v34  ;;  %1373 = vst [vmem:[#allocation2 + $0x20] sm:$0xff] %v1357_v40  ;;  %v1358_v31 = vadd.f32 %v2809_v21, %v1133_v4  ;;  %v2872_v18 = vpop.f32.mrb[11].mxu1  ;;  %v1892_v40 = vld [vmem:[#allocation2 + $0xc0] sm:$0xff] }
 0x23d   : > { %1839 = vst.msk [vmem:[#allocation3 + $0xb8] sm:$0xff] %vm1074_vm1, %v1823_v61  ;;  %v2113_v15 = vadd.f32 %v2870_v29, %v1888_v27  ;;  %v2873_v24 = vadd.f32 %v2872_v18, %v2871_v41  ;;  %v1137_v61 = vld [vmem:[#allocation2 + $0x48] sm:$0xff]  ;;  %v1894_v18 = vld [vmem:[#allocation2 + $0xd0] sm:$0xff] }
 0x23e   : > { %1840 = vst.msk [vmem:[#allocation3 + $0xc0] sm:$0xff] %vm1074_vm1, %v1824_v33  ;;  %v1797_v30 = vpop.xlane.xlu0 %1796  ;;  %1374 = vst [vmem:[#allocation2 + $0x28] sm:$0xff] %v1358_v31  ;;  %v1138_v31 = vld [vmem:[#allocation2 + $0x50] sm:$0xff] }
 0x23f   : > { %v1800_v14 = vpop.xlane.xlu1 %1799  ;;  %v1825_v52 = vadd.f32 %v1797_v30, %v1761_v32  ;;  %2129 = vst [vmem:[#allocation2 + $0xa0] sm:$0xff] %v2113_v15  ;;  %v2114_v56 = vadd.f32 %v2873_v24, %v1889_v7 }
 0x240   : > { %v1826_v55 = vadd.f32 %v1800_v14, %v1762_v26 }
 0x241   : > { %1841 = vst.msk [vmem:[#allocation3 + $0xc8] sm:$0xff] %vm1074_vm1, %v1825_v52  ;;  %2130 = vst [vmem:[#allocation2 + $0xa8] sm:$0xff] %v2114_v56 }
 0x242   : > { %1842 = vst.msk [vmem:[#allocation3 + $0xd0] sm:$0xff] %vm1074_vm1, %v1826_v55  ;;  %v1803_v58 = vpop.xlane.xlu0 %1802 }
 0x243   : > { %v1806_v63 = vpop.xlane.xlu1 %1805  ;;  %v1827_v57 = vadd.f32 %v1803_v58, %v1763_v44 }
 0x244   : > { %v1828_v48 = vadd.f32 %v1806_v63, %v1764_v13  ;;  %v1139_v13 = vld [vmem:[#allocation2 + $0x58] sm:$0xff] }
 0x245   : > { %1843 = vst.msk [vmem:[#allocation3 + $0xd8] sm:$0xff] %vm1074_vm1, %v1827_v57 }
 0x246   : > { %1844 = vst.msk [vmem:[#allocation3 + $0xe0] sm:$0xff] %vm1074_vm1, %v1828_v48  ;;  %v1809_v11 = vpop.xlane.xlu0 %1808  ;;  %v1895_v48 = vld [vmem:[#allocation2 + $0xd8] sm:$0xff] }
 0x247   : > { %v1812_v47 = vpop.xlane.xlu1 %1811  ;;  %v1829_v19 = vadd.f32 %v1809_v11, %v1765_v28  ;;  %v2810_v23 = vpop.f32.mrb[12].mxu0 }
 0x248   : > { %v1830_v54 = vadd.f32 %v1812_v47, %v1766_v17  ;;  %v2811_v36 = vpop.f32.mrb[13].mxu0 }
 0x249   : > { %1845 = vst.msk [vmem:[#allocation3 + $0xe8] sm:$0xff] %vm1074_vm1, %v1829_v19  ;;  %v2812_v53 = vadd.f32 %v2811_v36, %v2810_v23  ;;  %v2813_v49 = vpop.f32.mrb[14].mxu0 }
 0x24a   : > { %1846 = vst.msk [vmem:[#allocation3 + $0xf0] sm:$0xff] %vm1074_vm1, %v1830_v54  ;;  %v1815_v35 = vpop.xlane.xlu0 %1814  ;;  %v2814_v10 = vpop.f32.mrb[15].mxu0 }
 0x24b   : > { %v1831_v5 = vadd.f32 %v1815_v35, %v1767_v6  ;;  %v2874_v42 = vpop.f32.mrb[12].mxu1  ;;  %v1359_v38 = vadd.f32 %v2812_v53, %v1134_v46  ;;  %v2815_v25 = vadd.f32 %v2814_v10, %v2813_v49  ;;  %v1140_v6 = vld [vmem:[#allocation2 + $0x60] sm:$0xff] }
 0x24c   : > { %v2875_v43 = vpop.f32.mrb[13].mxu1  ;;  %v1896_v53 = vld [vmem:[#allocation2 + $0xe0] sm:$0xff] }
 0x24d   : > { %1847 = vst.msk [vmem:[#allocation3 + $0xf8] sm:$0xff] %vm1074_vm1, %v1831_v5  ;;  %1375 = vst [vmem:[#allocation2 + $0x30] sm:$0xff] %v1359_v38  ;;  %v2876_v1 = vadd.f32 %v2875_v43, %v2874_v42  ;;  %v2877_v8 = vpop.f32.mrb[14].mxu1  ;;  %v1360_v59 = vadd.f32 %v2815_v25, %v1135_v12  ;;  %v1141_v5 = vld [vmem:[#allocation2 + $0x68] sm:$0xff] }
 0x24e   : > { %v2878_v0 = vpop.f32.mrb[15].mxu1 }
 0x24f   : > { %v2115_v2 = vadd.f32 %v2876_v1, %v1890_v39  ;;  %1376 = vst [vmem:[#allocation2 + $0x38] sm:$0xff] %v1360_v59  ;;  %v2879_v60 = vadd.f32 %v2878_v0, %v2877_v8  ;;  %v1897_v39 = vld [vmem:[#allocation2 + $0xe8] sm:$0xff] }
 0x251   : > { %2131 = vst [vmem:[#allocation2 + $0xb0] sm:$0xff] %v2115_v2  ;;  %v2116_v34 = vadd.f32 %v2879_v60, %v1891_v9  ;;  %v1142_v2 = vld [vmem:[#allocation2 + $0x70] sm:$0xff] }
 0x253   : > { %2132 = vst [vmem:[#allocation2 + $0xb8] sm:$0xff] %v2116_v34 }
 0x259   : > { %v2816_v16 = vpop.f32.mrb[16].mxu0 }
 0x25a   : > { %v2817_v22 = vpop.f32.mrb[17].mxu0 }
 0x25b   : > { %v2818_v37 = vadd.f32 %v2817_v22, %v2816_v16  ;;  %v2819_v62 = vpop.f32.mrb[18].mxu0  ;;  %v1898_v22 = vld [vmem:[#allocation2 + $0xf0] sm:$0xff] }
 0x25c   : > { %v2880_v50 = vpop.f32.mrb[16].mxu1  ;;  %v2820_v33 = vpop.f32.mrb[19].mxu0 }
 0x25d   : > { %v1361_v3 = vadd.f32 %v2818_v37, %v1136_v51  ;;  %v2881_v4 = vpop.f32.mrb[17].mxu1  ;;  %v2821_v20 = vadd.f32 %v2820_v33, %v2819_v62  ;;  %v1143_v62 = vld [vmem:[#allocation2 + $0x78] sm:$0xff] }
 0x25e   : > { %v2882_v32 = vadd.f32 %v2881_v4, %v2880_v50  ;;  %v2883_v26 = vpop.f32.mrb[18].mxu1  ;;  %v1899_v4 = vld [vmem:[#allocation2 + $0xf8] sm:$0xff] }
 0x25f   : > { %1377 = vst [vmem:[#allocation2 + $0x40] sm:$0xff] %v1361_v3  ;;  %v1362_v27 = vadd.f32 %v2821_v20, %v1137_v61  ;;  %v2884_v21 = vpop.f32.mrb[19].mxu1 }
 0x260   : > { %v2117_v29 = vadd.f32 %v2882_v32, %v1892_v40  ;;  %v2885_v41 = vadd.f32 %v2884_v21, %v2883_v26  ;;  %v2147_v21 = vld [vmem:[#allocation3 + $0x10] sm:$0xff] (!%p2767_p8) }
 0x261   : > { %1378 = vst [vmem:[#allocation2 + $0x48] sm:$0xff] %v1362_v27 }
 0x262   : > { %2133 = vst [vmem:[#allocation2 + $0xc0] sm:$0xff] %v2117_v29  ;;  %v2118_v30 = vadd.f32 %v2885_v41, %v1893_v45  ;;  %v2145_v29 = vld [vmem:[#allocation3] sm:$0xff] (!%p2767_p8)  ;;  %v2148_v41 = vld [vmem:[#allocation3 + $0x18] sm:$0xff] (!%p2767_p8) }
 0x264   : > { %v2822_v14 = vpop.f32.mrb[20].mxu0  ;;  %2134 = vst [vmem:[#allocation2 + $0xc8] sm:$0xff] %v2118_v30  ;;  %v3353_v30 = vmov (!%p2767_p8), 0  }
 0x265   : > { %v2823_v52 = vpop.f32.mrb[21].mxu0  ;;  %v2886_v55 = vpop.f32.mrb[20].mxu1  ;;  %3186 = vset.pattern.permute.xlu1 (!%p2767_p8), %v3353_v30  ;;  %3185 = vset.pattern.permute.xlu0 (!%p2767_p8), %v3353_v30  ;;  %v2169_v30 = vld [vmem:[#allocation3 + $0xc0] sm:$0xff] (!%p2767_p8) }
 0x266   : > { %v2824_v15 = vadd.f32 %v2823_v52, %v2822_v14  ;;  %v2825_v7 = vpop.f32.mrb[22].mxu0  ;;  %v2887_v44 = vpop.f32.mrb[21].mxu1  ;;  %v2179_v14 = vmax.f32 (!%p2767_p8), %v2147_v21, 1e-20  ;;  %v2180_v52 = vmax.f32 (!%p2767_p8), %v2148_v41, 1e-20 }
 0x267   : > { %v2826_v24 = vpop.f32.mrb[23].mxu0  ;;  %v2888_v63 = vadd.f32 %v2887_v44, %v2886_v55  ;;  %v2889_v56 = vpop.f32.mrb[22].mxu1  ;;  %v2146_v55 = vld [vmem:[#allocation3 + $0x8] sm:$0xff] (!%p2767_p8) }
 0x268   : > { %v1363_v58 = vadd.f32 %v2824_v15, %v1138_v31  ;;  %v2827_v57 = vadd.f32 %v2826_v24, %v2825_v7  ;;  %v2890_v28 = vpop.f32.mrb[23].mxu1  ;;  %v2177_v31 = vmax.f32 (!%p2767_p8), %v2145_v29, 1e-20  ;;  %v2150_v15 = vld [vmem:[#allocation3 + $0x28] sm:$0xff] (!%p2767_p8)  ;;  %3187 = vrcp.f32 (!%p2767_p8), %v2179_v14  ;;  %v2152_v24 = vld [vmem:[#allocation3 + $0x38] sm:$0xff] (!%p2767_p8) }
 0x269   : > { %v2119_v17 = vadd.f32 %v2888_v63, %v1894_v18  ;;  %v2891_v47 = vadd.f32 %v2890_v28, %v2889_v56  ;;  %v2178_v7 = vmax.f32 (!%p2767_p8), %v2146_v55, 1e-20  ;;  %v2149_v18 = vld [vmem:[#allocation3 + $0x20] sm:$0xff] (!%p2767_p8)  ;;  %v2182_v44 = vmax.f32 (!%p2767_p8), %v2150_v15, 1e-20  ;;  %v2170_v29 = vld [vmem:[#allocation3 + $0xc8] sm:$0xff] (!%p2767_p8) }
 0x26a   : > { %1379 = vst [vmem:[#allocation2 + $0x50] sm:$0xff] %v1363_v58  ;;  %v1364_v11 = vadd.f32 %v2827_v57, %v1139_v13  ;;  %3189 = vrcp.f32 (!%p2767_p8), %v2177_v31  ;;  %v2181_v13 = vmax.f32 (!%p2767_p8), %v2149_v18, 1e-20  ;;  %v2151_v58 = vld [vmem:[#allocation3 + $0x30] sm:$0xff] (!%p2767_p8)  ;;  %v2184_v63 = vmax.f32 (!%p2767_p8), %v2152_v24, 1e-20 }
 0x26b   : > { %2135 = vst [vmem:[#allocation2 + $0xd0] sm:$0xff] %v2119_v17  ;;  %v2120_v19 = vadd.f32 %v2891_v47, %v1895_v48  ;;  %3191 = vrcp.f32 (!%p2767_p8), %v2180_v52  ;;  %v2183_v56 = vmax.f32 (!%p2767_p8), %v2151_v58, 1e-20  ;;  %v2154_v57 = vld [vmem:[#allocation3 + $0x48] sm:$0xff] (!%p2767_p8)  ;;  %v2153_v48 = vld [vmem:[#allocation3 + $0x40] sm:$0xff] (!%p2767_p8)  ;;  %v2172_v55 = vld [vmem:[#allocation3 + $0xd8] sm:$0xff] (!%p2767_p8) }
 0x26c   : > { %1380 = vst [vmem:[#allocation2 + $0x58] sm:$0xff] %v1364_v11  ;;  %v2828_v54 = vpop.f32.mrb[24].mxu0  ;;  %3193 = vrcp.f32 (!%p2767_p8), %v2178_v7  ;;  %v2186_v17 = vmax.f32 (!%p2767_p8), %v2154_v57, 1e-20  ;;  %v2185_v47 = vmax.f32 (!%p2767_p8), %v2153_v48, 1e-20 }
 0x26d   : > { %v2829_v23 = vpop.f32.mrb[25].mxu0  ;;  %2136 = vst [vmem:[#allocation2 + $0xd8] sm:$0xff] %v2120_v19  ;;  %v2892_v46 = vpop.f32.mrb[24].mxu1  ;;  %3195 = vrcp.f32 (!%p2767_p8), %v2182_v44  ;;  %v2156_v19 = vld [vmem:[#allocation3 + $0x58] sm:$0xff] (!%p2767_p8)  ;;  %v2202_v31 = vmax.f32 (!%p2767_p8), %v2170_v29, 1e-20 }
 0x26e   : > { %v2830_v36 = vadd.f32 %v2829_v23, %v2828_v54  ;;  %v2831_v35 = vpop.f32.mrb[26].mxu0  ;;  %v2893_v49 = vpop.f32.mrb[25].mxu1  ;;  %3197 = vrcp.f32 (!%p2767_p8), %v2181_v13  ;;  %v2201_v52 = vmax.f32 (!%p2767_p8), %v2169_v30, 1e-20  ;;  %v2171_v7 = vld [vmem:[#allocation3 + $0xd0] sm:$0xff] (!%p2767_p8)  ;;  %v2174_v24 = vld [vmem:[#allocation3 + $0xe8] sm:$0xff] (!%p2767_p8) }
 0x26f   : > { %v2832_v12 = vpop.f32.mrb[27].mxu0  ;;  %v2894_v42 = vadd.f32 %v2893_v49, %v2892_v46  ;;  %v2895_v38 = vpop.f32.mrb[26].mxu1  ;;  %3199 = vrcp.f32 (!%p2767_p8), %v2184_v63  ;;  %v2188_v46 = vmax.f32 (!%p2767_p8), %v2156_v19, 1e-20  ;;  %v2157_v49 = vld [vmem:[#allocation3 + $0x60] sm:$0xff] (!%p2767_p8) }
 0x270   : > { %v1365_v10 = vadd.f32 %v2830_v36, %v1140_v6  ;;  %v2833_v25 = vadd.f32 %v2832_v12, %v2831_v35  ;;  %v2896_v43 = vpop.f32.mrb[27].mxu1  ;;  %3201 = vrcp.f32 (!%p2767_p8), %v2183_v56  ;;  %v2155_v6 = vld [vmem:[#allocation3 + $0x50] sm:$0xff] (!%p2767_p8)  ;;  %v2158_v35 = vld [vmem:[#allocation3 + $0x68] sm:$0xff] (!%p2767_p8)  ;;  %v2204_v44 = vmax.f32 (!%p2767_p8), %v2172_v55, 1e-20  ;;  %v2173_v63 = vld [vmem:[#allocation3 + $0xe0] sm:$0xff] (!%p2767_p8) }
 0x271   : > { %v2121_v1 = vadd.f32 %v2894_v42, %v1896_v53  ;;  %v2897_v59 = vadd.f32 %v2896_v43, %v2895_v38  ;;  %3203 = vrcp.f32 (!%p2767_p8), %v2186_v17  ;;  %v2187_v36 = vmax.f32 (!%p2767_p8), %v2155_v6, 1e-20  ;;  %v2160_v42 = vld [vmem:[#allocation3 + $0x78] sm:$0xff] (!%p2767_p8) }
 0x272   : > { %1381 = vst [vmem:[#allocation2 + $0x60] sm:$0xff] %v1365_v10  ;;  %v1366_v8 = vadd.f32 %v2833_v25, %v1141_v5  ;;  %v3188_v28 = vpop.eup (!%p2767_p8), %3187  ;;  %3205 = vrcp.f32 (!%p2767_p8), %v2185_v47  ;;  %v2190_v12 = vmax.f32 (!%p2767_p8), %v2158_v35, 1e-20  ;;  %v2189_v10 = vmax.f32 (!%p2767_p8), %v2157_v49, 1e-20  ;;  %v2159_v25 = vld [vmem:[#allocation3 + $0x70] sm:$0xff] (!%p2767_p8) }
 0x273   : > { %2137 = vst [vmem:[#allocation2 + $0xe0] sm:$0xff] %v2121_v1  ;;  %v2122_v9 = vadd.f32 %v2897_v59, %v1897_v39  ;;  %2285 = vperm.xlu1 (!%p2767_p8), %3186, %v3188_v28   ;;  %3207 = vrcp.f32 (!%p2767_p8), %v2188_v46  ;;  %v2192_v43 = vmax.f32 (!%p2767_p8), %v2160_v42, 1e-20  ;;  %v2191_v1 = vmax.f32 (!%p2767_p8), %v2159_v25, 1e-20  ;;  %v2176_v28 = vld [vmem:[#allocation3 + $0xf8] sm:$0xff] (!%p2767_p8) }
 0x274   : > { %1382 = vst [vmem:[#allocation2 + $0x68] sm:$0xff] %v1366_v8  ;;  %v2834_v0 = vpop.f32.mrb[28].mxu0  ;;  %v3190_v11 = vpop.eup (!%p2767_p8), %3189  ;;  %3209 = vrcp.f32 (!%p2767_p8), %v2187_v36  ;;  %v2162_v8 = vld [vmem:[#allocation3 + $0x88] sm:$0xff] (!%p2767_p8)  ;;  %v2203_v13 = vmax.f32 (!%p2767_p8), %v2171_v7, 1e-20 }
 0x275   : > { %v2835_v60 = vpop.f32.mrb[29].mxu0  ;;  %2138 = vst [vmem:[#allocation2 + $0xe8] sm:$0xff] %v2122_v9  ;;  %v2898_v34 = vpop.f32.mrb[28].mxu1  ;;  %2275 = vperm.xlu0 (!%p2767_p8), %3185, %v3190_v11   ;;  %3211 = vrcp.f32 (!%p2767_p8), %v2190_v12  ;;  %v2161_v9 = vld [vmem:[#allocation3 + $0x80] sm:$0xff] (!%p2767_p8)  ;;  %v2206_v57 = vmax.f32 (!%p2767_p8), %v2174_v24, 1e-20 }
 0x276   : > { %v2836_v16 = vadd.f32 %v2835_v60, %v2834_v0  ;;  %v2837_v51 = vpop.f32.mrb[30].mxu0  ;;  %v2899_v37 = vpop.f32.mrb[29].mxu1  ;;  %3213 = vrcp.f32 (!%p2767_p8), %v2189_v10  ;;  %v2193_v60 = vmax.f32 (!%p2767_p8), %v2161_v9, 1e-20  ;;  %v2205_v48 = vmax.f32 (!%p2767_p8), %v2173_v63, 1e-20 }
 0x277   : > { %v2838_v50 = vpop.f32.mrb[31].mxu0  ;;  %v2900_v33 = vadd.f32 %v2899_v37, %v2898_v34  ;;  %v2901_v3 = vpop.f32.mrb[30].mxu1  ;;  %2144 = sbr.rel (%p2767_p8) target bundleno = 821 (0x335), region = 139  ;;  %3215 = vrcp.f32 (!%p2767_p8), %v2192_v43  ;;  %v2164_v34 = vld [vmem:[#allocation3 + $0x98] sm:$0xff] (!%p2767_p8)  ;;  %v2175_v11 = vld [vmem:[#allocation3 + $0xf0] sm:$0xff] (!%p2767_p8)  ;;  %v2241_v10 = vld [vmem:[#allocation2] sm:$0xff] (!%p2767_p8) }
 0x278   : > { %v1367_v61 = vadd.f32 %v2836_v16, %v1142_v2  ;;  %v2839_v40 = vadd.f32 %v2838_v50, %v2837_v51  ;;  %v2902_v20 = vpop.f32.mrb[31].mxu1  ;;  %v3192_v54 = vpop.eup (!%p2767_p8), %3191  ;;  %v2194_v2 = vmax.f32 (!%p2767_p8), %v2162_v8, 1e-20  ;;  %3217 = vrcp.f32 (!%p2767_p8), %v2191_v1  ;;  %v2163_v51 = vld [vmem:[#allocation3 + $0x90] sm:$0xff] (!%p2767_p8)  ;;  %v2166_v50 = vld [vmem:[#allocation3 + $0xa8] sm:$0xff] (!%p2767_p8)  ;;  %v2244_v43 = vld [vmem:[#allocation2 + $0x18] sm:$0xff] (!%p2767_p8) }
 0x279   : > { %v2123_v32 = vadd.f32 %v2900_v33, %v1898_v22  ;;  %v2903_v27 = vadd.f32 %v2902_v20, %v2901_v3  ;;  %v3194_v23 = vpop.eup (!%p2767_p8), %3193  ;;  %2290 = vperm.xlu1 (!%p2767_p8), %3186, %v3192_v54   ;;  %v2196_v37 = vmax.f32 (!%p2767_p8), %v2164_v34, 1e-20  ;;  %v2165_v33 = vld [vmem:[#allocation3 + $0xa0] sm:$0xff] (!%p2767_p8)  ;;  %v2168_v20 = vld [vmem:[#allocation3 + $0xb8] sm:$0xff] (!%p2767_p8)  ;;  %v2208_v19 = vmax.f32 (!%p2767_p8), %v2176_v28, 1e-20 }
 0x27a   : > { %1383 = vst [vmem:[#allocation2 + $0x70] sm:$0xff] %v1367_v61  ;;  %v1368_v26 = vadd.f32 %v2839_v40, %v1143_v62  ;;  %v3196_v53 = vpop.eup (!%p2767_p8), %3195  ;;  %2280 = vperm.xlu0 (!%p2767_p8), %3185, %v3194_v23   ;;  %3219 = vrcp.f32 (!%p2767_p8), %v2194_v2  ;;  %v2195_v62 = vmax.f32 (!%p2767_p8), %v2163_v51, 1e-20  ;;  %v2198_v40 = vmax.f32 (!%p2767_p8), %v2166_v50, 1e-20  ;;  %v2243_v12 = vld [vmem:[#allocation2 + $0x10] sm:$0xff] (!%p2767_p8) }
 0x27b   : > { %2139 = vst [vmem:[#allocation2 + $0xf0] sm:$0xff] %v2123_v32  ;;  %v2124_v45 = vadd.f32 %v2903_v27, %v1899_v4  ;;  %v3198_v5 = vpop.eup (!%p2767_p8), %3197  ;;  %3221 = vrcp.f32 (!%p2767_p8), %v2193_v60  ;;  %v2197_v4 = vmax.f32 (!%p2767_p8), %v2165_v33, 1e-20  ;;  %v2207_v54 = vmax.f32 (!%p2767_p8), %v2175_v11, 1e-20  ;;  %v2242_v1 = vld [vmem:[#allocation2 + $0x8] sm:$0xff] (!%p2767_p8) }
 0x27c   : > { %1384 = vst [vmem:[#allocation2 + $0x78] sm:$0xff] %v1368_v26  ;;  %v3200_v38 = vpop.eup (!%p2767_p8), %3199  ;;  %3223 = vrcp.f32 (!%p2767_p8), %v2196_v37  ;;  %v2167_v26 = vld [vmem:[#allocation3 + $0xb0] sm:$0xff] (!%p2767_p8)  ;;  %v2246_v2 = vld [vmem:[#allocation2 + $0x28] sm:$0xff] (!%p2767_p8)  ;;  %v2245_v60 = vld [vmem:[#allocation2 + $0x20] sm:$0xff] (!%p2767_p8) }
 0x27d   : > { %2140 = vst [vmem:[#allocation2 + $0xf8] sm:$0xff] %v2124_v45  ;;  %2300 = vperm.xlu1 (!%p2767_p8), %3186, %v3196_v53   ;;  %v3202_v39 = vpop.eup (!%p2767_p8), %3201  ;;  %3225 = vrcp.f32 (!%p2767_p8), %v2195_v62  ;;  %v2200_v45 = vmax.f32 (!%p2767_p8), %v2168_v20, 1e-20  ;;  %v2199_v21 = vmax.f32 (!%p2767_p8), %v2167_v26, 1e-20  ;;  %v2248_v37 = vld [vmem:[#allocation2 + $0x38] sm:$0xff] (!%p2767_p8) }
 0x27e   : > { %2295 = vperm.xlu0 %3185, %v3198_v5   ;;  %v3204_v59 = vpop.eup %3203  ;;  %3227 = vrcp.f32 %v2198_v40  ;;  %v2247_v62 = vld [vmem:[#allocation2 + $0x30] sm:$0xff]  ;;  %v2250_v40 = vld [vmem:[#allocation2 + $0x48] sm:$0xff] }
 0x27f   : > { %v3206_v0 = vpop.eup %3205  ;;  %3229 = vrcp.f32 %v2197_v4  ;;  %v2249_v4 = vld [vmem:[#allocation2 + $0x40] sm:$0xff] }
 0x280   : > { %v3208_v16 = vpop.eup %3207  ;;  %3231 = vrcp.f32 %v2200_v45  ;;  %v2252_v45 = vld [vmem:[#allocation2 + $0x58] sm:$0xff] }
 0x281   : > { %2310 = vperm.xlu1 %3186, %v3200_v38   ;;  %v3210_v22 = vpop.eup %3209  ;;  %3233 = vrcp.f32 %v2199_v21  ;;  %v2251_v21 = vld [vmem:[#allocation2 + $0x50] sm:$0xff] }
 0x282   : > { %2305 = vperm.xlu0 %3185, %v3202_v39   ;;  %v3212_v61 = vpop.eup %3211  ;;  %3235 = vrcp.f32 %v2202_v31  ;;  %v2254_v31 = vld [vmem:[#allocation2 + $0x68] sm:$0xff] }
 0x283   : > { %v3214_v3 = vpop.eup %3213  ;;  %3237 = vrcp.f32 %v2201_v52  ;;  %v2253_v52 = vld [vmem:[#allocation2 + $0x60] sm:$0xff] }
 0x284   : > { %v3216_v32 = vpop.eup %3215  ;;  %3239 = vrcp.f32 %v2204_v44  ;;  %v2256_v44 = vld [vmem:[#allocation2 + $0x78] sm:$0xff] }
 0x285   : > { %2320 = vperm.xlu1 %3186, %v3204_v59   ;;  %v3218_v27 = vpop.eup %3217  ;;  %3241 = vrcp.f32 %v2203_v13  ;;  %v2255_v13 = vld [vmem:[#allocation2 + $0x70] sm:$0xff] }
 0x286   : > { %2315 = vperm.xlu0 %3185, %v3206_v0   ;;  %v3220_v41 = vpop.eup %3219  ;;  %3243 = vrcp.f32 %v2206_v57  ;;  %v2258_v57 = vld [vmem:[#allocation2 + $0x88] sm:$0xff] }
 0x287   : > { %v3222_v14 = vpop.eup %3221  ;;  %3245 = vrcp.f32 %v2205_v48  ;;  %v2257_v48 = vld [vmem:[#allocation2 + $0x80] sm:$0xff] }
 0x288   : > { %v3224_v15 = vpop.eup %3223  ;;  %3247 = vrcp.f32 %v2208_v19  ;;  %v2260_v19 = vld [vmem:[#allocation2 + $0x98] sm:$0xff] }
 0x289   : > { %2330 = vperm.xlu1 %3186, %v3208_v16   ;;  %v3226_v18 = vpop.eup %3225  ;;  %3249 = vrcp.f32 %v2207_v54  ;;  %v2259_v54 = vld [vmem:[#allocation2 + $0x90] sm:$0xff] }
 0x28a   : > { %2325 = vperm.xlu0 %3185, %v3210_v22   ;;  %v3228_v58 = vpop.eup %3227 }
 0x28b   : > { %v3230_v56 = vpop.eup %3229 }
 0x28c   : > { %v3232_v17 = vpop.eup %3231 }
 0x28d   : > { %2340 = vperm.xlu1 %3186, %v3212_v61   ;;  %v3234_v47 = vpop.eup %3233 }
 0x28e   : > { %2335 = vperm.xlu0 %3185, %v3214_v3   ;;  %v3236_v6 = vpop.eup %3235 }
 0x28f   : > { %v3238_v23 = vpop.eup %3237 }
 0x290   : > { %v3240_v46 = vpop.eup %3239 }
 0x291   : > { %2350 = vperm.xlu1 %3186, %v3216_v32   ;;  %v3242_v36 = vpop.eup %3241 }
 0x292   : > { %2345 = vperm.xlu0 %3185, %v3218_v27   ;;  %v3244_v35 = vpop.eup %3243 }
 0x293   : > { %v3246_v53 = vpop.eup %3245 }
 0x294   : > { %v3248_v49 = vpop.eup %3247 }
 0x295   : > { %2360 = vperm.xlu1 %3186, %v3220_v41   ;;  %v3250_v5 = vpop.eup %3249 }
 0x296   : > { %2355 = vperm.xlu0 %3185, %v3222_v14  }
 0x299   : > { %2370 = vperm.xlu1 %3186, %v3224_v15  }
 0x29a   : > { %2365 = vperm.xlu0 %3185, %v3226_v18  }
 0x29d   : > { %2380 = vperm.xlu1 %3186, %v3228_v58  }
 0x29e   : > { %2375 = vperm.xlu0 %3185, %v3230_v56  }
 0x2a1   : > { %2390 = vperm.xlu1 %3186, %v3232_v17  }
 0x2a2   : > { %2385 = vperm.xlu0 %3185, %v3234_v47  }
 0x2a5   : > { %2400 = vperm.xlu1 %3186, %v3236_v6  }
 0x2a6   : > { %2395 = vperm.xlu0 %3185, %v3238_v23  }
 0x2a9   : > { %2410 = vperm.xlu1 %3186, %v3240_v46  }
 0x2aa   : > { %2405 = vperm.xlu0 %3185, %v3242_v36  }
 0x2ad   : > { %2420 = vperm.xlu1 %3186, %v3244_v35   ;;  %v2262_v35 = vld [vmem:[#allocation2 + $0xa8] sm:$0xff] }
 0x2ae   : > { %2415 = vperm.xlu0 %3185, %v3246_v53   ;;  %v2261_v53 = vld [vmem:[#allocation2 + $0xa0] sm:$0xff] }
 0x2b1   : > { %2430 = vperm.xlu1 %3186, %v3248_v49  }
 0x2b2   : > { %2425 = vperm.xlu0 %3185, %v3250_v5  }
 0x2f2   : > { %v2286_v42 = vpop.permute.xlu1 %2285 }
 0x2f3   : > { %v2435_v38 = vmul.f32 %v2286_v42, %v2243_v12  ;;  %v2264_v42 = vld [vmem:[#allocation2 + $0xb8] sm:$0xff] }
 0x2f4   : > { %v2276_v25 = vpop.permute.xlu0 %2275 }
 0x2f5   : > { %v2433_v39 = vmul.f32 %v2276_v25, %v2241_v10  ;;  %2467 = vst [vmem:[%s3617_s10 + $0x10] sm:$0xff] %v2435_v38  ;;  %v2263_v38 = vld [vmem:[#allocation2 + $0xb0] sm:$0xff] }
 0x2f7   : > { %2465 = vst [vmem:[%s3617_s10] sm:$0xff] %v2433_v39 }
 0x2f8   : > { %v2291_v8 = vpop.permute.xlu1 %2290 }
 0x2f9   : > { %v2436_v59 = vmul.f32 %v2291_v8, %v2244_v43  ;;  %v2281_v9 = vpop.permute.xlu0 %2280  ;;  %v2266_v8 = vld [vmem:[#allocation2 + $0xc8] sm:$0xff] }
 0x2fa   : > { %v2434_v0 = vmul.f32 %v2281_v9, %v2242_v1 }
 0x2fb   : > { %2468 = vst [vmem:[%s3617_s10 + $0x18] sm:$0xff] %v2436_v59  ;;  %v2265_v59 = vld [vmem:[#allocation2 + $0xc0] sm:$0xff] }
 0x2fc   : > { %2466 = vst [vmem:[%s3617_s10 + $0x8] sm:$0xff] %v2434_v0  ;;  %v2301_v34 = vpop.permute.xlu1 %2300 }
 0x2fd   : > { %v2438_v16 = vmul.f32 %v2301_v34, %v2246_v2  ;;  %v2296_v51 = vpop.permute.xlu0 %2295  ;;  %v2268_v34 = vld [vmem:[#allocation2 + $0xd8] sm:$0xff] }
 0x2fe   : > { %v2437_v22 = vmul.f32 %v2296_v51, %v2245_v60 }
 0x2ff   : > { %2470 = vst [vmem:[%s3617_s10 + $0x28] sm:$0xff] %v2438_v16  ;;  %v2267_v16 = vld [vmem:[#allocation2 + $0xd0] sm:$0xff] }
 0x300   : > { %2469 = vst [vmem:[%s3617_s10 + $0x20] sm:$0xff] %v2437_v22  ;;  %v2311_v50 = vpop.permute.xlu1 %2310 }
 0x301   : > { %v2440_v61 = vmul.f32 %v2311_v50, %v2248_v37  ;;  %v2306_v33 = vpop.permute.xlu0 %2305  ;;  %v2270_v50 = vld [vmem:[#allocation2 + $0xe8] sm:$0xff] }
 0x302   : > { %v2439_v3 = vmul.f32 %v2306_v33, %v2247_v62 }
 0x303   : > { %2472 = vst [vmem:[%s3617_s10 + $0x38] sm:$0xff] %v2440_v61  ;;  %v2269_v61 = vld [vmem:[#allocation2 + $0xe0] sm:$0xff] }
 0x304   : > { %2471 = vst [vmem:[%s3617_s10 + $0x30] sm:$0xff] %v2439_v3  ;;  %v2321_v20 = vpop.permute.xlu1 %2320 }
 0x305   : > { %v2442_v32 = vmul.f32 %v2321_v20, %v2250_v40  ;;  %v2316_v26 = vpop.permute.xlu0 %2315  ;;  %v2272_v20 = vld [vmem:[#allocation2 + $0xf8] sm:$0xff] }
 0x306   : > { %v2441_v27 = vmul.f32 %v2316_v26, %v2249_v4 }
 0x307   : > { %2474 = vst [vmem:[%s3617_s10 + $0x48] sm:$0xff] %v2442_v32  ;;  %v2271_v32 = vld [vmem:[#allocation2 + $0xf0] sm:$0xff] }
 0x308   : > { %2473 = vst [vmem:[%s3617_s10 + $0x40] sm:$0xff] %v2441_v27  ;;  %v2331_v29 = vpop.permute.xlu1 %2330 }
 0x309   : > { %v2444_v41 = vmul.f32 %v2331_v29, %v2252_v45  ;;  %v2326_v30 = vpop.permute.xlu0 %2325 }
 0x30a   : > { %v2443_v14 = vmul.f32 %v2326_v30, %v2251_v21 }
 0x30b   : > { %2476 = vst [vmem:[%s3617_s10 + $0x58] sm:$0xff] %v2444_v41 }
 0x30c   : > { %2475 = vst [vmem:[%s3617_s10 + $0x50] sm:$0xff] %v2443_v14  ;;  %v2341_v55 = vpop.permute.xlu1 %2340 }
 0x30d   : > { %v2446_v15 = vmul.f32 %v2341_v55, %v2254_v31  ;;  %v2336_v7 = vpop.permute.xlu0 %2335 }
 0x30e   : > { %v2445_v18 = vmul.f32 %v2336_v7, %v2253_v52 }
 0x30f   : > { %2478 = vst [vmem:[%s3617_s10 + $0x68] sm:$0xff] %v2446_v15 }
 0x310   : > { %2477 = vst [vmem:[%s3617_s10 + $0x60] sm:$0xff] %v2445_v18  ;;  %v2351_v24 = vpop.permute.xlu1 %2350 }
 0x311   : > { %v2448_v58 = vmul.f32 %v2351_v24, %v2256_v44  ;;  %v2346_v63 = vpop.permute.xlu0 %2345 }
 0x312   : > { %v2447_v56 = vmul.f32 %v2346_v63, %v2255_v13 }
 0x313   : > { %2480 = vst [vmem:[%s3617_s10 + $0x78] sm:$0xff] %v2448_v58 }
 0x314   : > { %2479 = vst [vmem:[%s3617_s10 + $0x70] sm:$0xff] %v2447_v56  ;;  %v2361_v28 = vpop.permute.xlu1 %2360 }
 0x315   : > { %v2450_v17 = vmul.f32 %v2361_v28, %v2258_v57  ;;  %v2356_v11 = vpop.permute.xlu0 %2355 }
 0x316   : > { %v2449_v47 = vmul.f32 %v2356_v11, %v2257_v48 }
 0x317   : > { %2482 = vst [vmem:[%s3617_s10 + $0x88] sm:$0xff] %v2450_v17 }
 0x318   : > { %2481 = vst [vmem:[%s3617_s10 + $0x80] sm:$0xff] %v2449_v47  ;;  %v2371_v6 = vpop.permute.xlu1 %2370 }
 0x319   : > { %v2452_v23 = vmul.f32 %v2371_v6, %v2260_v19  ;;  %v2366_v46 = vpop.permute.xlu0 %2365 }
 0x31a   : > { %v2451_v36 = vmul.f32 %v2366_v46, %v2259_v54 }
 0x31b   : > { %2484 = vst [vmem:[%s3617_s10 + $0x98] sm:$0xff] %v2452_v23 }
 0x31c   : > { %2483 = vst [vmem:[%s3617_s10 + $0x90] sm:$0xff] %v2451_v36  ;;  %v2381_v49 = vpop.permute.xlu1 %2380 }
 0x31d   : > { %v2454_v5 = vmul.f32 %v2381_v49, %v2262_v35  ;;  %v2376_v12 = vpop.permute.xlu0 %2375 }
 0x31e   : > { %v2453_v10 = vmul.f32 %v2376_v12, %v2261_v53 }
 0x31f   : > { %2486 = vst [vmem:[%s3617_s10 + $0xa8] sm:$0xff] %v2454_v5 }
 0x320   : > { %2485 = vst [vmem:[%s3617_s10 + $0xa0] sm:$0xff] %v2453_v10  ;;  %v2391_v25 = vpop.permute.xlu1 %2390 }
 0x321   : > { %v2456_v39 = vmul.f32 %v2391_v25, %v2264_v42  ;;  %v2386_v43 = vpop.permute.xlu0 %2385 }
 0x322   : > { %v2455_v1 = vmul.f32 %v2386_v43, %v2263_v38 }
 0x323   : > { %2488 = vst [vmem:[%s3617_s10 + $0xb8] sm:$0xff] %v2456_v39 }
 0x324   : > { %2487 = vst [vmem:[%s3617_s10 + $0xb0] sm:$0xff] %v2455_v1  ;;  %v2401_v9 = vpop.permute.xlu1 %2400 }
 0x325   : > { %v2458_v0 = vmul.f32 %v2401_v9, %v2266_v8  ;;  %v2396_v2 = vpop.permute.xlu0 %2395 }
 0x326   : > { %v2457_v60 = vmul.f32 %v2396_v2, %v2265_v59 }
 0x327   : > { %2490 = vst [vmem:[%s3617_s10 + $0xc8] sm:$0xff] %v2458_v0 }
 0x328   : > { %2489 = vst [vmem:[%s3617_s10 + $0xc0] sm:$0xff] %v2457_v60  ;;  %v2411_v51 = vpop.permute.xlu1 %2410 }
 0x329   : > { %v2460_v22 = vmul.f32 %v2411_v51, %v2268_v34  ;;  %v2406_v37 = vpop.permute.xlu0 %2405 }
 0x32a   : > { %v2459_v62 = vmul.f32 %v2406_v37, %v2267_v16 }
 0x32b   : > { %2492 = vst [vmem:[%s3617_s10 + $0xd8] sm:$0xff] %v2460_v22 }
 0x32c   : > { %2491 = vst [vmem:[%s3617_s10 + $0xd0] sm:$0xff] %v2459_v62  ;;  %v2421_v33 = vpop.permute.xlu1 %2420 }
 0x32d   : > { %v2462_v3 = vmul.f32 %v2421_v33, %v2270_v50  ;;  %v2416_v40 = vpop.permute.xlu0 %2415 }
 0x32e   : > { %v2461_v4 = vmul.f32 %v2416_v40, %v2269_v61 }
 0x32f   : > { %2494 = vst [vmem:[%s3617_s10 + $0xe8] sm:$0xff] %v2462_v3 }
 0x330   : > { %2493 = vst [vmem:[%s3617_s10 + $0xe0] sm:$0xff] %v2461_v4  ;;  %v2431_v26 = vpop.permute.xlu1 %2430 }
 0x331   : > { %v2464_v27 = vmul.f32 %v2431_v26, %v2272_v20  ;;  %v2426_v45 = vpop.permute.xlu0 %2425 }
 0x332   : > { %v2463_v21 = vmul.f32 %v2426_v45, %v2271_v32 }
 0x333   : > { %2496 = vst [vmem:[%s3617_s10 + $0xf8] sm:$0xff] %v2464_v27 }
 0x334   : > { %2495 = vst [vmem:[%s3617_s10 + $0xf0] sm:$0xff] %v2463_v21 }
 0x335 PF: > { %s2498_s22 = scalar_lea.sflag [#allocation8], %s436_s21 }
 0x336   : > { %s2775_s8 = sshll.u32 %s3337_s23, 11  ;;  %s2527_s5 = sshll.u32 %s3617_s10, 4  ;;  %s2528_s5 = int_to_ptr.vmem [resolvable:$true] %s2527_s5 }
 0x337   : > { %s2510_s13 = scalar_lea.hbm %s4401_s4, %s2775_s8  ;;  %s3354_s6 = smov 2048  }
 0x338   : > { %2904 = sst [smem:[#allocation10]] (%p3504_p4), %s3354_s6  ;;  %s3355_s21 = smov 6144  }
 0x339   : > { %2905 = sst [smem:[#allocation10 + $0x1]] (%p3504_p4), %s3355_s21  ;;  %s3356_s27 = smov 16  }
 0x33a   : > { %2906 = sst [smem:[#allocation10 + $0x2]] (%p3504_p4), %s3356_s27  ;;  %s3357_s16 = smov 128  }
 0x33b   : > { %2907 = sst [smem:[#allocation10 + $0x3]] (%p3504_p4), %s3357_s16  ;;  %s3358_s23 = smov 8  }
 0x33c   : > { %2908 = sst [smem:[#allocation10 + $0x4]] (%p3504_p4), %s3357_s16  ;;  %s3359_s10 = smov [#allocation9]  }
 0x33d   : > { %2909 = sst [smem:[#allocation10 + $0x5]] (%p3504_p4), %s3358_s23  ;;  %s3360_s18 = smov 0  }
 0x33e   : > { %2910 = dma.general (%p3504_p4), %s2528_s5, 4096, %s2510_s13, %s2498_s22, %s3359_s10, [#allocation10], %s3360_s18, 0  }
 0x33f PF: > { %p2916_p9 = scmp.ge.s32.totalorder %s3349_s26, 2  ;;  %s2555_s28 = sand.u32 1, %s3305_s15  }
 0x340   : > { %s2556_s0 = scalar_lea.sflag [#allocation8], %s2555_s28 }
 0x341   : > { %p2913_p10 = pnand %p2916_p9, %p3508_p5 }
 0x343   : > { %3300 = dma.done.wait (!%p2913_p10), %s2556_s0, 4096  }
 0x344   : > { %3302 = vsyncadd (!%p2913_p10), %s2556_s0, 4294963200  ;;  %s17_s26 = sadd.s32 1, %s3349_s26   ;;  %s4441_s30 = sld [smem:[#allocation15_spill]] }
 0x345   : > { %p14_p11 = scmp.ge.s32.totalorder %s17_s26, 8   ;;  %s4442_s14 = sld [smem:[#allocation12_spill]] }
 0x346   : > { %s4443_s21 = sld [smem:[#allocation16_spill]]  ;;  %s4444_s9 = sld [smem:[#allocation13_spill]] }
 0x347   : > { %s4445_s8 = sld [smem:[#allocation14_spill]]  ;;  %s4446_s15 = smov %s3325_s20 }
 0x348   : > { %s4447_s16 = smov %s3313_s17  ;;  %s4448_s17 = smov %s3489_s29 }
 0x349   : > { %s4449_s18 = smov %s3321_s19  ;;  %s4452_s22 = smov %s3341_s24 }
 0x34a   : > { %s4450_s19 = smov %s4441_s30  ;;  %s4453_s23 = smov %s3345_s25 }
 0x34b   : > { %s4451_s20 = smov %s4442_s14  ;;  %16 = sbr.rel (!%p14_p11) target bundleno = 9 (0x9), region = 206 }
 0x34c   : > { %s4454_s24 = smov %s4444_s9 }
 0x34d   : > { %s4455_s25 = smov %s4445_s8 }
 0x352   :  { %2561 = vsyncpa [#allocation8], 1 }
 0x353   :  { %2563 = vsyncpa [#allocation8 + $0x1], 1 }

</bundles_post_ra>
